<compile_context>
chip_gen: v5e
topology: v5e:2x2
jax: 0.10.0
libtpu: 0.0.40
codegen_flags: <defaults>
</compile_context>

<pallas_src>
import functools
import math
from typing import NamedTuple

import jax
import jax.numpy as jnp
from jax import lax
from jax.experimental import pallas as pl
from jax.experimental.pallas import tpu as pltpu


# Row indices inside the small f32 "vector slab" (biases / LN params / decoder).
_V_B_IN, _V_B_QKV, _V_B_O = 0, 1, 2
_V_LN1_G, _V_LN1_B = 3, 4
_V_B_FF1, _V_B_FF2 = 5, 6
_V_LN2_G, _V_LN2_B = 7, 8
_V_W_DEC, _V_B_DEC = 9, 10
_V_ROWS = 16  # padded to full sublane tiles


class Layout(NamedTuple):
    """Static row offsets of the matrix blocks inside the packed weight slab."""
    input_dim: int
    d_model: int
    dff: int
    nhead: int
    ncols: int
    r_w_in: int
    r_w_qkv: int
    r_w_o: int
    r_w_ff1: int
    r_w_ff2: int
    w_rows: int


def _round_up(x, m):
    return (x + m - 1) // m * m


def _layernorm(x, gamma, beta, eps=1e-5):
    mu = jnp.mean(x, axis=-1, keepdims=True)
    xc = x - mu
    var = jnp.mean(xc * xc, axis=-1, keepdims=True)
    return xc * lax.rsqrt(var + eps) * gamma + beta


# ----------------------------------------------------------------------------- 
# Kernel
# -----------------------------------------------------------------------------
def _encoder_kernel(src_ref, pe_ref, w_ref, vec_ref, vmask_ref, smask_ref,
                    out_ref, *, layout, seqs_per_block, seq_len):
    L = layout
    D, H, dff = L.d_model, L.nhead, L.dff
    N = seq_len
    Bt = seqs_per_block
    mxu_dtype = w_ref.dtype

    def mdot(a, b):
        # MXU matmul with inputs cast to the slab dtype (bf16 on v6e/v7x for
        # ~3-6x throughput and half the weight DMA), f32 accumulation.
        return jnp.dot(a.astype(mxu_dtype), b.astype(mxu_dtype),
                       preferred_element_type=jnp.float32)

    # ---- weights: static slices of the single packed matrix slab -------------
    w_in = w_ref[L.r_w_in:L.r_w_in + L.input_dim, 0:D]
    if L.ncols == 3 * D:
        w_qkv = w_ref[L.r_w_qkv:L.r_w_qkv + D, :]        # full lane width
    else:
        w_qkv = w_ref[L.r_w_qkv:L.r_w_qkv + D, 0:3 * D]
    w_o = w_ref[L.r_w_o:L.r_w_o + D, 0:D]
    w_ff1 = w_ref[L.r_w_ff1:L.r_w_ff1 + D, 0:dff]
    w_ff2 = w_ref[L.r_w_ff2:L.r_w_ff2 + dff, 0:D]

    # ---- biases / LN / decoder params: ONE dense f32 load, static sub-rows ---
    vec = vec_ref[...]
    b_in = vec[_V_B_IN:_V_B_IN + 1, 0:D]
    b_qkv = vec[_V_B_QKV:_V_B_QKV + 1, 0:3 * D]
    b_o = vec[_V_B_O:_V_B_O + 1, 0:D]
    ln1_g = vec[_V_LN1_G:_V_LN1_G + 1, 0:D]
    ln1_b = vec[_V_LN1_B:_V_LN1_B + 1, 0:D]
    b_ff1 = vec[_V_B_FF1:_V_B_FF1 + 1, 0:dff]
    b_ff2 = vec[_V_B_FF2:_V_B_FF2 + 1, 0:D]
    ln2_g = vec[_V_LN2_G:_V_LN2_G + 1, 0:D]
    ln2_b = vec[_V_LN2_B:_V_LN2_B + 1, 0:D]
    w_dec = vec[_V_W_DEC:_V_W_DEC + 1, 0:D]
    b_dec = vec[_V_B_DEC:_V_B_DEC + 1, 0:1]

    v_mask = vmask_ref[...]   # (H*N, D): 1 where feature d belongs to head row//N
    s_mask = smask_ref[...]   # (H*N, H*N): 1 where row and col are in the same head group

    # ---- dense projections batched over all Bt*N rows (high MXU M-occupancy) -
    x = mdot(src_ref[...], w_in) + b_in + pe_ref[...]          # (Bt*N, D)
    qkv = mdot(x, w_qkv) + b_qkv                               # (Bt*N, 3D), q pre-scaled

    # ---- self-attention, per sequence (never across sequences) ---------------
    attn_rows = []
    for s in range(Bt):
        r0 = s * N
        q_s = qkv[r0:r0 + N, 0:D]                              # (N, D)
        k_s = qkv[r0:r0 + N, D:2 * D]                          # (N, D)
        v_s = qkv[r0:r0 + N, 2 * D:3 * D]                      # (N, D)
        # Replicate K/V along sublanes (cheap copies) and zero features outside
        # each head's slice: row h*N+n of k_exp holds K[n, :] restricted to
        # head h, so one K=D contraction yields all per-head scores at once.
        k_exp = jnp.concatenate([k_s] * H, axis=0) * v_mask    # (H*N, D)
        v_exp = jnp.concatenate([v_s] * H, axis=0) * v_mask    # (H*N, D)
        # Scores in the (N, H*N) "lanes = (head, key)" layout; scale already
        # folded into W_q / b_q at pack time.
        scores = lax.dot_general(
            q_s.astype(mxu_dtype), k_exp.astype(mxu_dtype),
            (((1,), (1,)), ((), ())),
            preferred_element_type=jnp.float32)                # (N, H*N)
        # Per-head softmax; a shared global-row max shift keeps it exact.
        scores = scores - jnp.max(scores, axis=-1, keepdims=True)
        p = jnp.exp(scores)
        # Per-head denominators broadcast across each N-lane group.  Kept as an
        # exact f32 matmul (it normalises the softmax and is tiny).
        denom = jnp.dot(p, s_mask, preferred_element_type=jnp.float32)
        p = p * pl.reciprocal(denom, approx=True)
        attn_rows.append(mdot(p, v_exp))                       # (N, D)

    attn = jnp.concatenate(attn_rows, axis=0)                  # (Bt*N, D)
    attn = mdot(attn, w_o) + b_o

    x = _layernorm(x + attn, ln1_g, ln1_b)

    # ---- feed-forward (ReLU), post-norm ---------------------------------------
    h = jnp.maximum(mdot(x, w_ff1) + b_ff1, 0.0)
    x = _layernorm(x + mdot(h, w_ff2) + b_ff2, ln2_g, ln2_b)

    # ---- decoder Linear(D, 1): VPU broadcast-multiply + lane reduction --------
    out_ref[...] = jnp.sum(x * w_dec, axis=-1, keepdims=True) + b_dec


# ----------------------------------------------------------------------------- 
# Host-side helpers: positional encoding, parameter packing, masks
# -----------------------------------------------------------------------------
def positional_encoding(n, d_model):
    """Matches the PositionalEncoding buffer pe[:n, 0, :]."""
    position = jnp.arange(n, dtype=jnp.float32)[:, None]
    div_term = jnp.exp(jnp.arange(0, d_model, 2, dtype=jnp.float32)
                       * (-math.log(10000.0) / d_model))
    ang = position * div_term
    pe = jnp.zeros((n, d_model), jnp.float32)
    pe = pe.at[:, 0::2].set(jnp.sin(ang))
    pe = pe.at[:, 1::2].set(jnp.cos(ang))
    return pe


def _head_masks(n, d_model, nhead):
    """Precomputed per-head masks (review: no in-kernel iota/where mask build)."""
    d_head = d_model // nhead
    hn = nhead * n
    row = jnp.arange(hn)[:, None]
    col_d = jnp.arange(d_model)[None, :]
    v_mask = (col_d // d_head == row // n).astype(jnp.float32)   # (H*N, D)
    col_c = jnp.arange(hn)[None, :]
    s_mask = (col_c // n == row // n).astype(jnp.float32)        # (H*N, H*N)
    return v_mask, s_mask


def init_params(key, input_dim, d_model=64):
    """Deterministic synthetic parameters.  Linear weights stored as (in, out)
    so the forward computes x @ W + b (== PyTorch x W^T + b)."""
    dff = 2 * d_model
    ks = jax.random.split(key, 8)

    def lin(k, fan_in, fan_out):
        bound = 1.0 / math.sqrt(fan_in)
        w = jax.random.uniform(k, (fan_in, fan_out), jnp.float32, -bound, bound)
        b = jax.random.uniform(jax.random.fold_in(k, 1), (1, fan_out),
                               jnp.float32, -bound, bound)
        return w, b

    w_in, b_in = lin(ks[0], input_dim, d_model)
    w_q, b_q = lin(ks[1], d_model, d_model)
    w_k, b_k = lin(ks[2], d_model, d_model)
    w_v, b_v = lin(ks[3], d_model, d_model)
    w_o, b_o = lin(ks[4], d_model, d_model)
    w_ff1, b_ff1 = lin(ks[5], d_model, dff)
    w_ff2, b_ff2 = lin(ks[6], dff, d_model)
    w_dec, b_dec = lin(ks[7], d_model, 1)

    return dict(
        w_in=w_in, b_in=b_in, w_q=w_q, b_q=b_q, w_k=w_k, b_k=b_k,
        w_v=w_v, b_v=b_v, w_o=w_o, b_o=b_o,
        ln1_g=jnp.ones((1, d_model), jnp.float32),
        ln1_b=jnp.zeros((1, d_model), jnp.float32),
        w_ff1=w_ff1, b_ff1=b_ff1, w_ff2=w_ff2, b_ff2=b_ff2,
        ln2_g=jnp.ones((1, d_model), jnp.float32),
        ln2_b=jnp.zeros((1, d_model), jnp.float32),
        w_dec=w_dec, b_dec=b_dec)


def pack_params(params, input_dim, d_model=64, nhead=8, mxu_dtype=jnp.bfloat16):
    """Pack matrices into ONE `mxu_dtype` slab and vectors into ONE f32 slab.
    Fuses QKV and folds the 1/sqrt(d_head) scale into W_q / b_q."""
    assert d_model % nhead == 0
    dff = 2 * d_model
    d_head = d_model // nhead
    scale = 1.0 / math.sqrt(d_head)
    ncols = max(3 * d_model, dff)

    align = 16  # bf16 sublane packing
    r_w_in = 0
    r_w_qkv = _round_up(input_dim, align)
    r_w_o = r_w_qkv + d_model
    r_w_ff1 = r_w_o + d_model
    r_w_ff2 = r_w_ff1 + d_model
    w_rows = r_w_ff2 + dff

    w_qkv = jnp.concatenate(
        [params["w_q"] * scale, params["w_k"], params["w_v"]], axis=1)
    b_qkv = jnp.concatenate(
        [params["b_q"] * scale, params["b_k"], params["b_v"]], axis=1)

    wslab = jnp.zeros((w_rows, ncols), jnp.float32)
    wslab = wslab.at[r_w_in:r_w_in + input_dim, 0:d_model].set(params["w_in"])
    wslab = wslab.at[r_w_qkv:r_w_qkv + d_model, 0:3 * d_model].set(w_qkv)
    wslab = wslab.at[r_w_o:r_w_o + d_model, 0:d_model].set(params["w_o"])
    wslab = wslab.at[r_w_ff1:r_w_ff1 + d_model, 0:dff].set(params["w_ff1"])
    wslab = wslab.at[r_w_ff2:r_w_ff2 + dff, 0:d_model].set(params["w_ff2"])
    wslab = wslab.astype(mxu_dtype)

    vecs = jnp.zeros((_V_ROWS, ncols), jnp.float32)
    rows = [
        (_V_B_IN, params["b_in"], d_model),
        (_V_B_QKV, b_qkv, 3 * d_model),
        (_V_B_O, params["b_o"], d_model),
        (_V_LN1_G, params["ln1_g"], d_model),
        (_V_LN1_B, params["ln1_b"], d_model),
        (_V_B_FF1, params["b_ff1"], dff),
        (_V_B_FF2, params["b_ff2"], d_model),
        (_V_LN2_G, params["ln2_g"], d_model),
        (_V_LN2_B, params["ln2_b"], d_model),
        (_V_W_DEC, params["w_dec"], d_model),
        (_V_B_DEC, params["b_dec"], 1),
    ]
    for row, val, width in rows:
        vecs = vecs.at[row, 0:width].set(jnp.asarray(val).reshape(-1))

    layout = Layout(input_dim=input_dim, d_model=d_model, dff=dff, nhead=nhead,
                    ncols=ncols, r_w_in=r_w_in, r_w_qkv=r_w_qkv, r_w_o=r_w_o,
                    r_w_ff1=r_w_ff1, r_w_ff2=r_w_ff2, w_rows=w_rows)
    return wslab, vecs, layout


# ----------------------------------------------------------------------------- 
# Wrapper
# -----------------------------------------------------------------------------
def _default_num_blocks(batch):
    # v7x has 2 TensorCores/chip -> one large "parallel" block per core.
    # On single-TC v5e/v6e extra grid steps are pure overhead.
    try:
        kind = jax.devices()[0].device_kind.lower()
    except Exception:
        kind = ""
    n_tc = 2 if "v7" in kind else 1
    nb = min(n_tc, batch)
    while nb > 1 and batch % nb:
        nb -= 1
    return max(nb, 1)


@functools.partial(jax.jit, static_argnames=("layout", "num_blocks"))
def _forward_impl(src, wslab, vecs, layout, num_blocks):
    B, N, I = src.shape
    D, H = layout.d_model, layout.nhead
    Bt = B // num_blocks
    M = Bt * N

    src_flat = src.reshape(B * N, I)
    pe_block = jnp.tile(positional_encoding(N, D), (Bt, 1))     # (M, D), const-folded
    v_mask, s_mask = _head_masks(N, D, H)

    kernel = functools.partial(_encoder_kernel, layout=layout,
                               seqs_per_block=Bt, seq_len=N)

    out = pl.pallas_call(
        kernel,
        out_shape=jax.ShapeDtypeStruct((B * N, 1), jnp.float32),
        grid_spec=pltpu.PrefetchScalarGridSpec(
            num_scalar_prefetch=0,
            grid=(num_blocks,),
            in_specs=[
                pl.BlockSpec((M, I), lambda b: (b, 0)),                      # src rows
                pl.BlockSpec((M, D), lambda b: (0, 0)),                      # pos. enc.
                pl.BlockSpec((layout.w_rows, layout.ncols), lambda b: (0, 0)),  # weights
                pl.BlockSpec((_V_ROWS, layout.ncols), lambda b: (0, 0)),     # bias slab
                pl.BlockSpec((H * N, D), lambda b: (0, 0)),                  # head mask
                pl.BlockSpec((H * N, H * N), lambda b: (0, 0)),              # group mask
            ],
            out_specs=pl.BlockSpec((M, 1), lambda b: (b, 0)),
        ),
        compiler_params=pltpu.CompilerParams(
            dimension_semantics=("parallel",),
            # Explicit limit, safe on every generation (v7x scoped VMEM is
            # 64 MiB/TC); current footprint is well under 1 MiB.
            vmem_limit_bytes=32 * 1024 * 1024),
    )(src_flat, pe_block, wslab, vecs, v_mask, s_mask)

    return out.reshape(B, N, 1)


def pyramid_transformer_forward(src, wslab, vecs, layout, num_blocks=None):
    """src: (N, input_dim) single sequence (original semantics) or
    (B, N, input_dim) batch of independent sequences."""
    src = jnp.asarray(src, jnp.float32)
    squeeze = src.ndim == 2
    if squeeze:
        src = src[None]
    B, N, I = src.shape
    assert I == layout.input_dim
    if num_blocks is None:
        num_blocks = _default_num_blocks(B)
    if B % num_blocks or ((B // num_blocks) * N) % 8:
        num_blocks = 1
    out = _forward_impl(src, wslab, vecs, layout=layout, num_blocks=num_blocks)
    return out[0] if squeeze else out


# ----------------------------------------------------------------------------- 
# Pure-JAX reference (PyTorch semantics) for correctness gating
# -----------------------------------------------------------------------------
def _reference_single(src, params, nhead):
    d_model = params["w_in"].shape[1]
    d_head = d_model // nhead
    n = src.shape[0]
    x = src @ params["w_in"] + params["b_in"]
    x = x + positional_encoding(n, d_model)
    q = x @ params["w_q"] + params["b_q"]
    k = x @ params["w_k"] + params["b_k"]
    v = x @ params["w_v"] + params["b_v"]

    def split(a):
        return a.reshape(n, nhead, d_head).transpose(1, 0, 2)   # (H, N, Dh)

    qh, kh, vh = split(q), split(k), split(v)
    s = jnp.einsum("hnd,hmd->hnm", qh, kh) / math.sqrt(d_head)
    p = jax.nn.softmax(s, axis=-1)
    o = jnp.einsum("hnm,hmd->hnd", p, vh).transpose(1, 0, 2).reshape(n, d_model)
    attn = o @ params["w_o"] + params["b_o"]
    x = _layernorm(x + attn, params["ln1_g"], params["ln1_b"])
    h = jax.nn.relu(x @ params["w_ff1"] + params["b_ff1"])
    x = _layernorm(x + h @ params["w_ff2"] + params["b_ff2"],
                   params["ln2_g"], params["ln2_b"])
    return x @ params["w_dec"] + params["b_dec"]


def reference_forward(src, params, nhead=8):
    if src.ndim == 2:
        return _reference_single(src, params, nhead)
    return jax.vmap(lambda s: _reference_single(s, params, nhead))(src)


# ----------------------------------------------------------------------------- 
if __name__ == "__main__":
    INPUT_DIM, D_MODEL, NHEAD = 16, 64, 8
    BATCH, SEQ = 4, 8

    key = jax.random.PRNGKey(0)
    k_src, k_par = jax.random.split(key)
    src = jax.random.normal(k_src, (BATCH, SEQ, INPUT_DIM), jnp.float32)

    params = init_params(k_par, INPUT_DIM, D_MODEL)

    # bf16 MXU-input fast path (the production path on v6e/v7x).
    wslab_bf16, vecs, layout = pack_params(params, INPUT_DIM, D_MODEL, NHEAD,
                                           mxu_dtype=jnp.bfloat16)
    out_bf16 = jax.block_until_ready(
        pyramid_transformer_forward(src, wslab_bf16, vecs, layout))

    # f32 MXU-input path (fidelity baseline; same kernel, f32 slab).
    wslab_f32, _, _ = pack_params(params, INPUT_DIM, D_MODEL, NHEAD,
                                  mxu_dtype=jnp.float32)
    out_f32 = jax.block_until_ready(
        pyramid_transformer_forward(src, wslab_f32, vecs, layout))

    # Pure-JAX reference with PyTorch semantics (unfused weights, per-head softmax).
    with jax.default_matmul_precision("highest"):
        ref = jax.block_until_ready(reference_forward(src, params, NHEAD))

    assert out_bf16.shape == (BATCH, SEQ, 1) and out_bf16.dtype == jnp.float32
    assert bool(jnp.all(jnp.isfinite(out_bf16)))
    assert bool(jnp.all(jnp.isfinite(out_f32)))
    # f32-MXU kernel vs reference: differences come only from the approx
    # softmax reciprocal and MXU accumulation order.
    err_f32 = float(jnp.max(jnp.abs(out_f32 - ref)))
    assert bool(jnp.allclose(out_f32, ref, rtol=1e-2, atol=1e-2)), err_f32
    # bf16 MXU inputs change numerics: gate the fast path behind a tolerance
    # check against the f32 run (per the review's correctness note).
    err_bf16 = float(jnp.max(jnp.abs(out_bf16 - out_f32)))
    assert bool(jnp.allclose(out_bf16, out_f32, rtol=1e-1, atol=1e-1)), err_bf16

    print("KERNEL_OK")
</pallas_src>

<mosaic_0001>
module attributes {stable_mosaic.version = 11 : i64} {
  func.func @_encoder_kernel(%arg0: i32, %arg1: memref<32x16xf32, #tpu.memory_space<vmem>>, %arg2: memref<32x64xf32, #tpu.memory_space<vmem>>, %arg3: memref<336x192xbf16, #tpu.memory_space<vmem>>, %arg4: memref<16x192xf32, #tpu.memory_space<vmem>>, %arg5: memref<64x64xf32, #tpu.memory_space<vmem>>, %arg6: memref<64x64xf32, #tpu.memory_space<vmem>>, %arg7: memref<32x1xf32, #tpu.memory_space<vmem>>) attributes {dimension_semantics = [#tpu.dimension_semantics<parallel>], iteration_bounds = array<i64: 1>, scalar_prefetch = 0 : i64, scratch_operands = 0 : i64, tpu.core_type = #tpu.core_type<tc>, window_params = [{transform_indices = @transform_0, window_bounds = array<i64: 32, 16>}, {pipeline_mode = #tpu.pipeline_mode<synchronous>, transform_indices = @transform_1, window_bounds = array<i64: 32, 64>}, {pipeline_mode = #tpu.pipeline_mode<synchronous>, transform_indices = @transform_2, window_bounds = array<i64: 336, 192>}, {pipeline_mode = #tpu.pipeline_mode<synchronous>, transform_indices = @transform_3, window_bounds = array<i64: 16, 192>}, {pipeline_mode = #tpu.pipeline_mode<synchronous>, transform_indices = @transform_4, window_bounds = array<i64: 64, 64>}, {pipeline_mode = #tpu.pipeline_mode<synchronous>, transform_indices = @transform_5, window_bounds = array<i64: 64, 64>}, {transform_indices = @transform_6, window_bounds = array<i64: 32, 1>}]} {
    %c0 = arith.constant 0 : index
    %c0_0 = arith.constant 0 : index
    %0 = vector.load %arg3[%c0, %c0_0] : memref<336x192xbf16, #tpu.memory_space<vmem>>, vector<16x64xbf16>
    %c16 = arith.constant 16 : index
    %c0_1 = arith.constant 0 : index
    %1 = vector.load %arg3[%c16, %c0_1] : memref<336x192xbf16, #tpu.memory_space<vmem>>, vector<64x192xbf16>
    %c80 = arith.constant 80 : index
    %c0_2 = arith.constant 0 : index
    %2 = vector.load %arg3[%c80, %c0_2] : memref<336x192xbf16, #tpu.memory_space<vmem>>, vector<64x64xbf16>
    %c144 = arith.constant 144 : index
    %c0_3 = arith.constant 0 : index
    %3 = vector.load %arg3[%c144, %c0_3] : memref<336x192xbf16, #tpu.memory_space<vmem>>, vector<64x128xbf16>
    %c208 = arith.constant 208 : index
    %c0_4 = arith.constant 0 : index
    %4 = vector.load %arg3[%c208, %c0_4] : memref<336x192xbf16, #tpu.memory_space<vmem>>, vector<128x64xbf16>
    %c0_5 = arith.constant 0 : index
    %c0_6 = arith.constant 0 : index
    %5 = vector.load %arg4[%c0_5, %c0_6] : memref<16x192xf32, #tpu.memory_space<vmem>>, vector<16x192xf32>
    %6 = vector.extract_strided_slice %5 {offsets = [0, 0], sizes = [1, 64], strides = [1, 1]} : vector<16x192xf32> to vector<1x64xf32>
    %7 = vector.extract_strided_slice %5 {offsets = [1, 0], sizes = [1, 192], strides = [1, 1]} : vector<16x192xf32> to vector<1x192xf32>
    %8 = vector.extract_strided_slice %5 {offsets = [2, 0], sizes = [1, 64], strides = [1, 1]} : vector<16x192xf32> to vector<1x64xf32>
    %9 = vector.extract_strided_slice %5 {offsets = [3, 0], sizes = [1, 64], strides = [1, 1]} : vector<16x192xf32> to vector<1x64xf32>
    %10 = vector.extract_strided_slice %5 {offsets = [4, 0], sizes = [1, 64], strides = [1, 1]} : vector<16x192xf32> to vector<1x64xf32>
    %11 = vector.extract_strided_slice %5 {offsets = [5, 0], sizes = [1, 128], strides = [1, 1]} : vector<16x192xf32> to vector<1x128xf32>
    %12 = vector.extract_strided_slice %5 {offsets = [6, 0], sizes = [1, 64], strides = [1, 1]} : vector<16x192xf32> to vector<1x64xf32>
    %13 = vector.extract_strided_slice %5 {offsets = [7, 0], sizes = [1, 64], strides = [1, 1]} : vector<16x192xf32> to vector<1x64xf32>
    %14 = vector.extract_strided_slice %5 {offsets = [8, 0], sizes = [1, 64], strides = [1, 1]} : vector<16x192xf32> to vector<1x64xf32>
    %15 = vector.extract_strided_slice %5 {offsets = [9, 0], sizes = [1, 64], strides = [1, 1]} : vector<16x192xf32> to vector<1x64xf32>
    %16 = vector.extract_strided_slice %5 {offsets = [10, 0], sizes = [1, 1], strides = [1, 1]} : vector<16x192xf32> to vector<1x1xf32>
    %c0_7 = arith.constant 0 : index
    %c0_8 = arith.constant 0 : index
    %17 = vector.load %arg5[%c0_7, %c0_8] : memref<64x64xf32, #tpu.memory_space<vmem>>, vector<64x64xf32>
    %c0_9 = arith.constant 0 : index
    %c0_10 = arith.constant 0 : index
    %18 = vector.load %arg6[%c0_9, %c0_10] : memref<64x64xf32, #tpu.memory_space<vmem>>, vector<64x64xf32>
    %c0_11 = arith.constant 0 : index
    %c0_12 = arith.constant 0 : index
    %19 = vector.load %arg1[%c0_11, %c0_12] : memref<32x16xf32, #tpu.memory_space<vmem>>, vector<32x16xf32>
    %20 = arith.truncf %19 : vector<32x16xf32> to vector<32x16xbf16>
    %cst = arith.constant dense<0.000000e+00> : vector<32x64xf32>
    %21 = tpu.matmul %20, %0, %cst {dimension_numbers = #tpu.dot_dimension_numbers<[1], [0], [0], [1], [0, 0, 1, 1], [], []>} : vector<32x16xbf16>, vector<16x64xbf16>, vector<32x64xf32> -> vector<32x64xf32>
    %22 = vector.broadcast %6 : vector<1x64xf32> to vector<32x64xf32>
    %23 = arith.addf %21, %22 : vector<32x64xf32>
    %c0_13 = arith.constant 0 : index
    %c0_14 = arith.constant 0 : index
    %24 = vector.load %arg2[%c0_13, %c0_14] : memref<32x64xf32, #tpu.memory_space<vmem>>, vector<32x64xf32>
    %25 = arith.addf %23, %24 : vector<32x64xf32>
    %26 = arith.truncf %25 : vector<32x64xf32> to vector<32x64xbf16>
    %cst_15 = arith.constant dense<0.000000e+00> : vector<32x192xf32>
    %27 = tpu.matmul %26, %1, %cst_15 {dimension_numbers = #tpu.dot_dimension_numbers<[1], [0], [0], [1], [0, 0, 1, 1], [], []>} : vector<32x64xbf16>, vector<64x192xbf16>, vector<32x192xf32> -> vector<32x192xf32>
    %28 = vector.broadcast %7 : vector<1x192xf32> to vector<32x192xf32>
    %29 = arith.addf %27, %28 : vector<32x192xf32>
    %30 = vector.extract_strided_slice %29 {offsets = [0, 0], sizes = [8, 64], strides = [1, 1]} : vector<32x192xf32> to vector<8x64xf32>
    %31 = vector.extract_strided_slice %29 {offsets = [0, 64], sizes = [8, 64], strides = [1, 1]} : vector<32x192xf32> to vector<8x64xf32>
    %32 = vector.extract_strided_slice %29 {offsets = [0, 128], sizes = [8, 64], strides = [1, 1]} : vector<32x192xf32> to vector<8x64xf32>
    %33 = tpu.concatenate %31, %31, %31, %31, %31, %31, %31, %31 in 0 : vector<8x64xf32>, vector<8x64xf32>, vector<8x64xf32>, vector<8x64xf32>, vector<8x64xf32>, vector<8x64xf32>, vector<8x64xf32>, vector<8x64xf32> -> vector<64x64xf32>
    %34 = arith.mulf %33, %17 : vector<64x64xf32>
    %35 = tpu.concatenate %32, %32, %32, %32, %32, %32, %32, %32 in 0 : vector<8x64xf32>, vector<8x64xf32>, vector<8x64xf32>, vector<8x64xf32>, vector<8x64xf32>, vector<8x64xf32>, vector<8x64xf32>, vector<8x64xf32> -> vector<64x64xf32>
    %36 = arith.mulf %35, %17 : vector<64x64xf32>
    %37 = arith.truncf %30 : vector<8x64xf32> to vector<8x64xbf16>
    %38 = arith.truncf %34 : vector<64x64xf32> to vector<64x64xbf16>
    %cst_16 = arith.constant dense<0.000000e+00> : vector<8x64xf32>
    %39 = tpu.matmul %37, %38, %cst_16 {dimension_numbers = #tpu.dot_dimension_numbers<[1], [1], [0], [0], [0, 0, 1, 0], [], []>} : vector<8x64xbf16>, vector<64x64xbf16>, vector<8x64xf32> -> vector<8x64xf32>
    %cst_17 = arith.constant dense<0xFF800000> : vector<8xf32>
    %40 = vector.multi_reduction <maximumf>, %39, %cst_17 [1] : vector<8x64xf32> to vector<8xf32>
    %41 = vector.shape_cast %40 : vector<8xf32> to vector<8x1xf32>
    %42 = vector.broadcast %41 : vector<8x1xf32> to vector<8x64xf32>
    %43 = arith.subf %39, %42 : vector<8x64xf32>
    %44 = math.exp %43 : vector<8x64xf32>
    %cst_18 = arith.constant dense<0.000000e+00> : vector<8x64xf32>
    %45 = tpu.matmul %44, %18, %cst_18 {dimension_numbers = #tpu.dot_dimension_numbers<[1], [0], [0], [1], [0, 0, 1, 1], [], []>} : vector<8x64xf32>, vector<64x64xf32>, vector<8x64xf32> -> vector<8x64xf32>
    %46 = tpu.reciprocal %45 {approx = true} : vector<8x64xf32> -> vector<8x64xf32>
    %47 = arith.mulf %44, %46 : vector<8x64xf32>
    %48 = arith.truncf %47 : vector<8x64xf32> to vector<8x64xbf16>
    %49 = arith.truncf %36 : vector<64x64xf32> to vector<64x64xbf16>
    %cst_19 = arith.constant dense<0.000000e+00> : vector<8x64xf32>
    %50 = tpu.matmul %48, %49, %cst_19 {dimension_numbers = #tpu.dot_dimension_numbers<[1], [0], [0], [1], [0, 0, 1, 1], [], []>} : vector<8x64xbf16>, vector<64x64xbf16>, vector<8x64xf32> -> vector<8x64xf32>
    %51 = vector.extract_strided_slice %29 {offsets = [8, 0], sizes = [8, 64], strides = [1, 1]} : vector<32x192xf32> to vector<8x64xf32>
    %52 = vector.extract_strided_slice %29 {offsets = [8, 64], sizes = [8, 64], strides = [1, 1]} : vector<32x192xf32> to vector<8x64xf32>
    %53 = vector.extract_strided_slice %29 {offsets = [8, 128], sizes = [8, 64], strides = [1, 1]} : vector<32x192xf32> to vector<8x64xf32>
    %54 = tpu.concatenate %52, %52, %52, %52, %52, %52, %52, %52 in 0 : vector<8x64xf32>, vector<8x64xf32>, vector<8x64xf32>, vector<8x64xf32>, vector<8x64xf32>, vector<8x64xf32>, vector<8x64xf32>, vector<8x64xf32> -> vector<64x64xf32>
    %55 = arith.mulf %54, %17 : vector<64x64xf32>
    %56 = tpu.concatenate %53, %53, %53, %53, %53, %53, %53, %53 in 0 : vector<8x64xf32>, vector<8x64xf32>, vector<8x64xf32>, vector<8x64xf32>, vector<8x64xf32>, vector<8x64xf32>, vector<8x64xf32>, vector<8x64xf32> -> vector<64x64xf32>
    %57 = arith.mulf %56, %17 : vector<64x64xf32>
    %58 = arith.truncf %51 : vector<8x64xf32> to vector<8x64xbf16>
    %59 = arith.truncf %55 : vector<64x64xf32> to vector<64x64xbf16>
    %cst_20 = arith.constant dense<0.000000e+00> : vector<8x64xf32>
    %60 = tpu.matmul %58, %59, %cst_20 {dimension_numbers = #tpu.dot_dimension_numbers<[1], [1], [0], [0], [0, 0, 1, 0], [], []>} : vector<8x64xbf16>, vector<64x64xbf16>, vector<8x64xf32> -> vector<8x64xf32>
    %cst_21 = arith.constant dense<0xFF800000> : vector<8xf32>
    %61 = vector.multi_reduction <maximumf>, %60, %cst_21 [1] : vector<8x64xf32> to vector<8xf32>
    %62 = vector.shape_cast %61 : vector<8xf32> to vector<8x1xf32>
    %63 = vector.broadcast %62 : vector<8x1xf32> to vector<8x64xf32>
    %64 = arith.subf %60, %63 : vector<8x64xf32>
    %65 = math.exp %64 : vector<8x64xf32>
    %cst_22 = arith.constant dense<0.000000e+00> : vector<8x64xf32>
    %66 = tpu.matmul %65, %18, %cst_22 {dimension_numbers = #tpu.dot_dimension_numbers<[1], [0], [0], [1], [0, 0, 1, 1], [], []>} : vector<8x64xf32>, vector<64x64xf32>, vector<8x64xf32> -> vector<8x64xf32>
    %67 = tpu.reciprocal %66 {approx = true} : vector<8x64xf32> -> vector<8x64xf32>
    %68 = arith.mulf %65, %67 : vector<8x64xf32>
    %69 = arith.truncf %68 : vector<8x64xf32> to vector<8x64xbf16>
    %70 = arith.truncf %57 : vector<64x64xf32> to vector<64x64xbf16>
    %cst_23 = arith.constant dense<0.000000e+00> : vector<8x64xf32>
    %71 = tpu.matmul %69, %70, %cst_23 {dimension_numbers = #tpu.dot_dimension_numbers<[1], [0], [0], [1], [0, 0, 1, 1], [], []>} : vector<8x64xbf16>, vector<64x64xbf16>, vector<8x64xf32> -> vector<8x64xf32>
    %72 = vector.extract_strided_slice %29 {offsets = [16, 0], sizes = [8, 64], strides = [1, 1]} : vector<32x192xf32> to vector<8x64xf32>
    %73 = vector.extract_strided_slice %29 {offsets = [16, 64], sizes = [8, 64], strides = [1, 1]} : vector<32x192xf32> to vector<8x64xf32>
    %74 = vector.extract_strided_slice %29 {offsets = [16, 128], sizes = [8, 64], strides = [1, 1]} : vector<32x192xf32> to vector<8x64xf32>
    %75 = tpu.concatenate %73, %73, %73, %73, %73, %73, %73, %73 in 0 : vector<8x64xf32>, vector<8x64xf32>, vector<8x64xf32>, vector<8x64xf32>, vector<8x64xf32>, vector<8x64xf32>, vector<8x64xf32>, vector<8x64xf32> -> vector<64x64xf32>
    %76 = arith.mulf %75, %17 : vector<64x64xf32>
    %77 = tpu.concatenate %74, %74, %74, %74, %74, %74, %74, %74 in 0 : vector<8x64xf32>, vector<8x64xf32>, vector<8x64xf32>, vector<8x64xf32>, vector<8x64xf32>, vector<8x64xf32>, vector<8x64xf32>, vector<8x64xf32> -> vector<64x64xf32>
    %78 = arith.mulf %77, %17 : vector<64x64xf32>
    %79 = arith.truncf %72 : vector<8x64xf32> to vector<8x64xbf16>
    %80 = arith.truncf %76 : vector<64x64xf32> to vector<64x64xbf16>
    %cst_24 = arith.constant dense<0.000000e+00> : vector<8x64xf32>
    %81 = tpu.matmul %79, %80, %cst_24 {dimension_numbers = #tpu.dot_dimension_numbers<[1], [1], [0], [0], [0, 0, 1, 0], [], []>} : vector<8x64xbf16>, vector<64x64xbf16>, vector<8x64xf32> -> vector<8x64xf32>
    %cst_25 = arith.constant dense<0xFF800000> : vector<8xf32>
    %82 = vector.multi_reduction <maximumf>, %81, %cst_25 [1] : vector<8x64xf32> to vector<8xf32>
    %83 = vector.shape_cast %82 : vector<8xf32> to vector<8x1xf32>
    %84 = vector.broadcast %83 : vector<8x1xf32> to vector<8x64xf32>
    %85 = arith.subf %81, %84 : vector<8x64xf32>
    %86 = math.exp %85 : vector<8x64xf32>
    %cst_26 = arith.constant dense<0.000000e+00> : vector<8x64xf32>
    %87 = tpu.matmul %86, %18, %cst_26 {dimension_numbers = #tpu.dot_dimension_numbers<[1], [0], [0], [1], [0, 0, 1, 1], [], []>} : vector<8x64xf32>, vector<64x64xf32>, vector<8x64xf32> -> vector<8x64xf32>
    %88 = tpu.reciprocal %87 {approx = true} : vector<8x64xf32> -> vector<8x64xf32>
    %89 = arith.mulf %86, %88 : vector<8x64xf32>
    %90 = arith.truncf %89 : vector<8x64xf32> to vector<8x64xbf16>
    %91 = arith.truncf %78 : vector<64x64xf32> to vector<64x64xbf16>
    %cst_27 = arith.constant dense<0.000000e+00> : vector<8x64xf32>
    %92 = tpu.matmul %90, %91, %cst_27 {dimension_numbers = #tpu.dot_dimension_numbers<[1], [0], [0], [1], [0, 0, 1, 1], [], []>} : vector<8x64xbf16>, vector<64x64xbf16>, vector<8x64xf32> -> vector<8x64xf32>
    %93 = vector.extract_strided_slice %29 {offsets = [24, 0], sizes = [8, 64], strides = [1, 1]} : vector<32x192xf32> to vector<8x64xf32>
    %94 = vector.extract_strided_slice %29 {offsets = [24, 64], sizes = [8, 64], strides = [1, 1]} : vector<32x192xf32> to vector<8x64xf32>
    %95 = vector.extract_strided_slice %29 {offsets = [24, 128], sizes = [8, 64], strides = [1, 1]} : vector<32x192xf32> to vector<8x64xf32>
    %96 = tpu.concatenate %94, %94, %94, %94, %94, %94, %94, %94 in 0 : vector<8x64xf32>, vector<8x64xf32>, vector<8x64xf32>, vector<8x64xf32>, vector<8x64xf32>, vector<8x64xf32>, vector<8x64xf32>, vector<8x64xf32> -> vector<64x64xf32>
    %97 = arith.mulf %96, %17 : vector<64x64xf32>
    %98 = tpu.concatenate %95, %95, %95, %95, %95, %95, %95, %95 in 0 : vector<8x64xf32>, vector<8x64xf32>, vector<8x64xf32>, vector<8x64xf32>, vector<8x64xf32>, vector<8x64xf32>, vector<8x64xf32>, vector<8x64xf32> -> vector<64x64xf32>
    %99 = arith.mulf %98, %17 : vector<64x64xf32>
    %100 = arith.truncf %93 : vector<8x64xf32> to vector<8x64xbf16>
    %101 = arith.truncf %97 : vector<64x64xf32> to vector<64x64xbf16>
    %cst_28 = arith.constant dense<0.000000e+00> : vector<8x64xf32>
    %102 = tpu.matmul %100, %101, %cst_28 {dimension_numbers = #tpu.dot_dimension_numbers<[1], [1], [0], [0], [0, 0, 1, 0], [], []>} : vector<8x64xbf16>, vector<64x64xbf16>, vector<8x64xf32> -> vector<8x64xf32>
    %cst_29 = arith.constant dense<0xFF800000> : vector<8xf32>
    %103 = vector.multi_reduction <maximumf>, %102, %cst_29 [1] : vector<8x64xf32> to vector<8xf32>
    %104 = vector.shape_cast %103 : vector<8xf32> to vector<8x1xf32>
    %105 = vector.broadcast %104 : vector<8x1xf32> to vector<8x64xf32>
    %106 = arith.subf %102, %105 : vector<8x64xf32>
    %107 = math.exp %106 : vector<8x64xf32>
    %cst_30 = arith.constant dense<0.000000e+00> : vector<8x64xf32>
    %108 = tpu.matmul %107, %18, %cst_30 {dimension_numbers = #tpu.dot_dimension_numbers<[1], [0], [0], [1], [0, 0, 1, 1], [], []>} : vector<8x64xf32>, vector<64x64xf32>, vector<8x64xf32> -> vector<8x64xf32>
    %109 = tpu.reciprocal %108 {approx = true} : vector<8x64xf32> -> vector<8x64xf32>
    %110 = arith.mulf %107, %109 : vector<8x64xf32>
    %111 = arith.truncf %110 : vector<8x64xf32> to vector<8x64xbf16>
    %112 = arith.truncf %99 : vector<64x64xf32> to vector<64x64xbf16>
    %cst_31 = arith.constant dense<0.000000e+00> : vector<8x64xf32>
    %113 = tpu.matmul %111, %112, %cst_31 {dimension_numbers = #tpu.dot_dimension_numbers<[1], [0], [0], [1], [0, 0, 1, 1], [], []>} : vector<8x64xbf16>, vector<64x64xbf16>, vector<8x64xf32> -> vector<8x64xf32>
    %114 = tpu.concatenate %50, %71, %92, %113 in 0 : vector<8x64xf32>, vector<8x64xf32>, vector<8x64xf32>, vector<8x64xf32> -> vector<32x64xf32>
    %115 = arith.truncf %114 : vector<32x64xf32> to vector<32x64xbf16>
    %cst_32 = arith.constant dense<0.000000e+00> : vector<32x64xf32>
    %116 = tpu.matmul %115, %2, %cst_32 {dimension_numbers = #tpu.dot_dimension_numbers<[1], [0], [0], [1], [0, 0, 1, 1], [], []>} : vector<32x64xbf16>, vector<64x64xbf16>, vector<32x64xf32> -> vector<32x64xf32>
    %117 = vector.broadcast %8 : vector<1x64xf32> to vector<32x64xf32>
    %118 = arith.addf %116, %117 : vector<32x64xf32>
    %119 = arith.addf %25, %118 : vector<32x64xf32>
    %cst_33 = arith.constant dense<0.000000e+00> : vector<32xf32>
    %120 = vector.multi_reduction <add>, %119, %cst_33 [1] : vector<32x64xf32> to vector<32xf32>
    %121 = vector.shape_cast %120 : vector<32xf32> to vector<32x1xf32>
    %cst_34 = arith.constant 6.400000e+01 : f32
    %122 = vector.broadcast %cst_34 : f32 to vector<32x1xf32>
    %123 = arith.divf %121, %122 : vector<32x1xf32>
    %124 = vector.broadcast %123 : vector<32x1xf32> to vector<32x64xf32>
    %125 = arith.subf %119, %124 : vector<32x64xf32>
    %126 = arith.mulf %125, %125 : vector<32x64xf32>
    %cst_35 = arith.constant dense<0.000000e+00> : vector<32xf32>
    %127 = vector.multi_reduction <add>, %126, %cst_35 [1] : vector<32x64xf32> to vector<32xf32>
    %128 = vector.shape_cast %127 : vector<32xf32> to vector<32x1xf32>
    %cst_36 = arith.constant 6.400000e+01 : f32
    %129 = vector.broadcast %cst_36 : f32 to vector<32x1xf32>
    %130 = arith.divf %128, %129 : vector<32x1xf32>
    %cst_37 = arith.constant 9.99999974E-6 : f32
    %131 = vector.broadcast %cst_37 : f32 to vector<32x1xf32>
    %132 = arith.addf %130, %131 : vector<32x1xf32>
    %133 = math.rsqrt %132 : vector<32x1xf32>
    %134 = vector.broadcast %133 : vector<32x1xf32> to vector<32x64xf32>
    %135 = arith.mulf %125, %134 : vector<32x64xf32>
    %136 = vector.broadcast %9 : vector<1x64xf32> to vector<32x64xf32>
    %137 = arith.mulf %135, %136 : vector<32x64xf32>
    %138 = vector.broadcast %10 : vector<1x64xf32> to vector<32x64xf32>
    %139 = arith.addf %137, %138 : vector<32x64xf32>
    %140 = arith.truncf %139 : vector<32x64xf32> to vector<32x64xbf16>
    %cst_38 = arith.constant dense<0.000000e+00> : vector<32x128xf32>
    %141 = tpu.matmul %140, %3, %cst_38 {dimension_numbers = #tpu.dot_dimension_numbers<[1], [0], [0], [1], [0, 0, 1, 1], [], []>} : vector<32x64xbf16>, vector<64x128xbf16>, vector<32x128xf32> -> vector<32x128xf32>
    %142 = vector.broadcast %11 : vector<1x128xf32> to vector<32x128xf32>
    %143 = arith.addf %141, %142 : vector<32x128xf32>
    %cst_39 = arith.constant 0.000000e+00 : f32
    %144 = vector.broadcast %cst_39 : f32 to vector<32x128xf32>
    %145 = arith.maximumf %143, %144 : vector<32x128xf32>
    %146 = arith.truncf %145 : vector<32x128xf32> to vector<32x128xbf16>
    %cst_40 = arith.constant dense<0.000000e+00> : vector<32x64xf32>
    %147 = tpu.matmul %146, %4, %cst_40 {dimension_numbers = #tpu.dot_dimension_numbers<[1], [0], [0], [1], [0, 0, 1, 1], [], []>} : vector<32x128xbf16>, vector<128x64xbf16>, vector<32x64xf32> -> vector<32x64xf32>
    %148 = arith.addf %139, %147 : vector<32x64xf32>
    %149 = vector.broadcast %12 : vector<1x64xf32> to vector<32x64xf32>
    %150 = arith.addf %148, %149 : vector<32x64xf32>
    %cst_41 = arith.constant dense<0.000000e+00> : vector<32xf32>
    %151 = vector.multi_reduction <add>, %150, %cst_41 [1] : vector<32x64xf32> to vector<32xf32>
    %152 = vector.shape_cast %151 : vector<32xf32> to vector<32x1xf32>
    %cst_42 = arith.constant 6.400000e+01 : f32
    %153 = vector.broadcast %cst_42 : f32 to vector<32x1xf32>
    %154 = arith.divf %152, %153 : vector<32x1xf32>
    %155 = vector.broadcast %154 : vector<32x1xf32> to vector<32x64xf32>
    %156 = arith.subf %150, %155 : vector<32x64xf32>
    %157 = arith.mulf %156, %156 : vector<32x64xf32>
    %cst_43 = arith.constant dense<0.000000e+00> : vector<32xf32>
    %158 = vector.multi_reduction <add>, %157, %cst_43 [1] : vector<32x64xf32> to vector<32xf32>
    %159 = vector.shape_cast %158 : vector<32xf32> to vector<32x1xf32>
    %cst_44 = arith.constant 6.400000e+01 : f32
    %160 = vector.broadcast %cst_44 : f32 to vector<32x1xf32>
    %161 = arith.divf %159, %160 : vector<32x1xf32>
    %cst_45 = arith.constant 9.99999974E-6 : f32
    %162 = vector.broadcast %cst_45 : f32 to vector<32x1xf32>
    %163 = arith.addf %161, %162 : vector<32x1xf32>
    %164 = math.rsqrt %163 : vector<32x1xf32>
    %165 = vector.broadcast %164 : vector<32x1xf32> to vector<32x64xf32>
    %166 = arith.mulf %156, %165 : vector<32x64xf32>
    %167 = vector.broadcast %13 : vector<1x64xf32> to vector<32x64xf32>
    %168 = arith.mulf %166, %167 : vector<32x64xf32>
    %169 = vector.broadcast %14 : vector<1x64xf32> to vector<32x64xf32>
    %170 = arith.addf %168, %169 : vector<32x64xf32>
    %171 = vector.broadcast %15 : vector<1x64xf32> to vector<32x64xf32>
    %172 = arith.mulf %170, %171 : vector<32x64xf32>
    %cst_46 = arith.constant dense<0.000000e+00> : vector<32xf32>
    %173 = vector.multi_reduction <add>, %172, %cst_46 [1] : vector<32x64xf32> to vector<32xf32>
    %174 = vector.shape_cast %173 : vector<32xf32> to vector<32x1xf32>
    %175 = vector.broadcast %16 : vector<1x1xf32> to vector<32x1xf32>
    %176 = arith.addf %174, %175 : vector<32x1xf32>
    %c0_47 = arith.constant 0 : index
    %c0_48 = arith.constant 0 : index
    %177 = vector.load %arg7[%c0_47, %c0_48] : memref<32x1xf32, #tpu.memory_space<vmem>>, vector<32x1xf32>
    tpu.vector_store %arg7[%c0_47, %c0_48], %176 {strides = array<i32>} : memref<32x1xf32, #tpu.memory_space<vmem>>, vector<32x1xf32>,
    return
  }
  func.func @transform_0(%arg0: i32) -> (i32, i32) {
    %c0_i32 = arith.constant 0 : i32
    %c0_i32_0 = arith.constant 0 : i32
    return %arg0, %c0_i32 : i32, i32
  }
  func.func @transform_1(%arg0: i32) -> (i32, i32) {
    %c0_i32 = arith.constant 0 : i32
    %c0_i32_0 = arith.constant 0 : i32
    %c0_i32_1 = arith.constant 0 : i32
    return %c0_i32, %c0_i32_0 : i32, i32
  }
  func.func @transform_2(%arg0: i32) -> (i32, i32) {
    %c0_i32 = arith.constant 0 : i32
    %c0_i32_0 = arith.constant 0 : i32
    %c0_i32_1 = arith.constant 0 : i32
    return %c0_i32, %c0_i32_0 : i32, i32
  }
  func.func @transform_3(%arg0: i32) -> (i32, i32) {
    %c0_i32 = arith.constant 0 : i32
    %c0_i32_0 = arith.constant 0 : i32
    %c0_i32_1 = arith.constant 0 : i32
    return %c0_i32, %c0_i32_0 : i32, i32
  }
  func.func @transform_4(%arg0: i32) -> (i32, i32) {
    %c0_i32 = arith.constant 0 : i32
    %c0_i32_0 = arith.constant 0 : i32
    %c0_i32_1 = arith.constant 0 : i32
    return %c0_i32, %c0_i32_0 : i32, i32
  }
  func.func @transform_5(%arg0: i32) -> (i32, i32) {
    %c0_i32 = arith.constant 0 : i32
    %c0_i32_0 = arith.constant 0 : i32
    %c0_i32_1 = arith.constant 0 : i32
    return %c0_i32, %c0_i32_0 : i32, i32
  }
  func.func @transform_6(%arg0: i32) -> (i32, i32) {
    %c0_i32 = arith.constant 0 : i32
    %c0_i32_0 = arith.constant 0 : i32
    return %arg0, %c0_i32 : i32, i32
  }
}

</mosaic_0001>

<bundles_post_ra>
// kernel: _forward_impl.1
= control target key start
LH: loop header
LB: loop body
LE: loop exit
PB: predicated region body
PF: predicated region fallthrough
CT: control target
= control target key end

     0   :  { %vm98_vm0 = vcmask 130048   ;;  %s1313_s19 = smov 64   ;;  %vm176_vm1 = vcmask 523264   ;;  %s1998_s2 = inlined_call_operand.vmem [shape: bf16[336,192], index: 2, kind: input, shape index: {}]   ;;  %s1999_s0 = inlined_call_operand.vmem [shape: f32[32,16], index: 0, kind: input, shape index: {}]   ;;  %s2000_s4 = inlined_call_operand.vmem [shape: f32[64,64], index: 4, kind: input, shape index: {}, may-alias: {4,5}]   ;;  %s2001_s3 = inlined_call_operand.vmem [shape: f32[16,192], index: 3, kind: input, shape index: {}]   ;;  %s2002_s1 = inlined_call_operand.vmem [shape: f32[32,64], index: 1, kind: input, shape index: {}]   ;;  %s2003_s5 = inlined_call_operand.vmem [shape: f32[64,64], index: 5, kind: input, shape index: {}, may-alias: {4,5}]   ;;  %s2004_s6 = inlined_call_operand.vmem [shape: f32[32,1], index: 6, kind: output, shape index: {}]  }
   0x1   :  { %v1131_v0 = vld [vmem:[%s1998_s2] sm:$0xf]  ;;  %v1251_v1 = vld [vmem:[%s1998_s2 + $0x4] sm:$0xf0]  ;;  %v87_v6 = vld [vmem:[%s1999_s0 + $0x10] sm:$0xff] }
   0x2   :  { %v85_v2 = vld [vmem:[%s1999_s0] sm:$0xff]  ;;  %v1132_v3 = vor.u32 %v1251_v1, %v1131_v0  ;;  %v86_v4 = vld [vmem:[%s1999_s0 + $0x8] sm:$0xff]  ;;  %v88_v7 = vld [vmem:[%s1999_s0 + $0x18] sm:$0xff] }
   0x3   :  { %v89_v5 = vpack.c.bf16 %v86_v4, %v85_v2  ;;  %v90_v8 = vpack.c.bf16 %v88_v7, %v87_v6  ;;  %v1161_v9 = vld [vmem:[%s1998_s2 + $0x40] sm:$0xf]  ;;  %v1259_v10 = vld [vmem:[%s1998_s2 + $0x44] sm:$0xf0]  ;;  %v1258_v11 = vld [vmem:[%s1998_s2 + $0x44] sm:$0xf] }
   0x4   :  { %112 = vmatpush.bf16.msra.mxu0 %v1132_v3  ;;  %v1162_v12 = vor.u32 %v1259_v10, %v1161_v9  ;;  %v1163_v13 = vld [vmem:[%s1998_s2 + $0x48] sm:$0xf0]  ;;  %v1153_v15 = vld [vmem:[%s1998_s2 + $0x30] sm:$0xf]  ;;  %v1257_v16 = vld [vmem:[%s1998_s2 + $0x34] sm:$0xf0] }
   0x5   :  { %v1166_v14 = vor.u32 %v1258_v11, %v1163_v13  ;;  %v1154_v17 = vor.u32 %v1257_v16, %v1153_v15  ;;  %v1256_v18 = vld [vmem:[%s1998_s2 + $0x34] sm:$0xf]  ;;  %v1155_v19 = vld [vmem:[%s1998_s2 + $0x38] sm:$0xf0]  ;;  %v1145_v21 = vld [vmem:[%s1998_s2 + $0x20] sm:$0xf] }
   0x6   :  { %187 = vmatpush.bf16.msra.mxu1 %v1162_v12  ;;  %v1158_v20 = vor.u32 %v1256_v18, %v1155_v19  ;;  %v1255_v22 = vld [vmem:[%s1998_s2 + $0x24] sm:$0xf0]  ;;  %v1254_v23 = vld [vmem:[%s1998_s2 + $0x24] sm:$0xf]  ;;  %v1147_v25 = vld [vmem:[%s1998_s2 + $0x28] sm:$0xf0] }
   0x7   :  { %1133 = vmatmul.msk.bf16.vlgmr.msra.gmra.mxu0 %vm98_vm0, %v89_v5  ;;  %206 = vmatpush.bf16.msra.mxu2 %v1166_v14  ;;  %v1146_v24 = vor.u32 %v1255_v22, %v1145_v21  ;;  %v1150_v26 = vor.u32 %v1254_v23, %v1147_v25  ;;  %v1137_v27 = vld [vmem:[%s1998_s2 + $0x10] sm:$0xf]  ;;  %v1253_v28 = vld [vmem:[%s1998_s2 + $0x14] sm:$0xf0]  ;;  %v1252_v30 = vld [vmem:[%s1998_s2 + $0x14] sm:$0xf] }
   0x8   :  { %v1138_v29 = vor.u32 %v1253_v28, %v1137_v27  ;;  %v1139_v31 = vld [vmem:[%s1998_s2 + $0x18] sm:$0xf0]  ;;  %v1419_v32 = vld [vmem:[%s2000_s4 + $0x30] sm:$0xff]  ;;  %v1424_v33 = vld [vmem:[%s2000_s4 + $0x20] sm:$0xff] }
   0x9   :  { %v1142_v34 = vor.u32 %v1252_v30, %v1139_v31  ;;  %241 = vrot.lane.b32.xlu0 %v1419_v32, %s1313_s19  ;;  %237 = vrot.lane.b32.xlu1 %v1424_v33, %s1313_s19  ;;  %v1433_v35 = vld [vmem:[%s2000_s4 + $0x38] sm:$0xff]  ;;  %v1438_v36 = vld [vmem:[%s2000_s4 + $0x28] sm:$0xff] }
   0xa   :  { %188 = vmatpush.bf16.msra.mxu1 %v1154_v17  ;;  %v1447_v37 = vld [vmem:[%s2000_s4 + $0x8] sm:$0xff]  ;;  %v1452_v38 = vld [vmem:[%s2000_s4] sm:$0xff]  ;;  %v1461_v39 = vld [vmem:[%s2000_s4 + $0x10] sm:$0xff] }
   0xb   :  { %207 = vmatpush.bf16.msra.mxu2 %v1158_v20  ;;  %v1466_v40 = vld [vmem:[%s2001_s3] sm:$0xff]  ;;  %233 = vrot.lane.b32.xlu2 %v1461_v39, %s1313_s19  ;;  %v1474_v43 = vld [vmem:[%s2000_s4 + $0x18] sm:$0xff]  ;;  %v125_v47 = vld [vmem:[%s2002_s1 + $0x8] sm:$0xff] }
   0xc   :  { %v91_v42 = vperm.slane %v1466_v40, 0  ;;  %v124_v45 = vld [vmem:[%s2002_s1] sm:$0xff]  ;;  %v126_v54 = vld [vmem:[%s2002_s1 + $0x10] sm:$0xff]  ;;  %v127_v56 = vld [vmem:[%s2002_s1 + $0x18] sm:$0xff]  ;;  %v1511_v63 = vperm.slane %v1466_v40, 1 }
   0xd   :  { %v67_v1 = vld [vmem:[%s2001_s3 + $0x8] sm:$0xff] }
   0xe   :  { %189 = vmatpush.bf16.msra.mxu1 %v1146_v24  ;;  %v1525_v6 = vperm.slane %v67_v1, 1 }
   0xf   :  { %208 = vmatpush.bf16.msra.mxu2 %v1150_v26 }
  0x11   :  { %243 = vrot.lane.b32.xlu0 %v1433_v35, %s1313_s19  ;;  %239 = vrot.lane.b32.xlu1 %v1438_v36, %s1313_s19 }
  0x12   :  { %190 = vmatpush.bf16.msra.mxu1 %v1138_v29 }
  0x13   :  { %209 = vmatpush.bf16.msra.mxu2 %v1142_v34  ;;  %235 = vrot.lane.b32.xlu2 %v1474_v43, %s1313_s19 }
  0x17   :  { %1134 = vmatmul.msk.bf16.gmra.mxu0 %vm98_vm0, %v90_v8 }
  0x19   :  { %231 = vrot.lane.b32.xlu1 %v1447_v37, %s1313_s19  ;;  %229 = vrot.lane.b32.xlu0 %v1452_v38, %s1313_s19 }
  0x65   :  { %v1516_v2 = vpop.permute.xlu2 %233 }
  0x6d   :  { %v1545_v21 = vpop.permute.xlu2 %235 }
  0x7b   :  { %v1506_v61 = vpop.permute.xlu0 %241  ;;  %v1508_v62 = vpop.permute.xlu1 %237 }
  0x83   :  { %v1521_v4 = vpop.permute.xlu0 %243  ;;  %v1523_v5 = vpop.permute.xlu1 %239 }
  0x84   :  { %v114_v41 = vpop.f32.mrf.mxu0 }
  0x85   :  { %v115_v44 = vadd.f32 %v114_v41, %v91_v42 }
  0x87   :  { %v1484_v49 = vadd.f32 %v124_v45, %v115_v44 }
  0x8b   :  { %v232_v34 = vpop.permute.xlu1 %231  ;;  %v230_v41 = vpop.permute.xlu0 %229 }
  0x8c   :  { %v116_v46 = vpop.f32.mrf.mxu0 }
  0x8d   :  { %v117_v48 = vadd.f32 %v116_v46, %v91_v42 }
  0x8f   :  { %v1486_v50 = vadd.f32 %v125_v47, %v117_v48 }
  0x91   :  { %v132_v51 = vpack.c.bf16 %v1486_v50, %v1484_v49 }
  0x93   :  { %1167 = vmatmul.msk.bf16.vlgmr.msra.gmra.mxu1 %vm176_vm1, %v132_v51  ;;  %1169 = vmatmul.msk.bf16.vlgmr.msra.gmra.mxu2 %vm176_vm1, %v132_v51 }
  0x94   :  { %v119_v52 = vpop.f32.mrf.mxu0 }
  0x95   :  { %v120_v53 = vadd.f32 %v119_v52, %v91_v42 }
  0x97   :  { %v1498_v57 = vadd.f32 %v126_v54, %v120_v53 }
  0x9c   :  { %v121_v55 = vpop.f32.mrf.mxu0 }
  0x9d   :  { %v122_v58 = vadd.f32 %v121_v55, %v91_v42 }
  0x9f   :  { %v1500_v59 = vadd.f32 %v127_v56, %v122_v58 }
  0xa1   :  { %v133_v60 = vpack.c.bf16 %v1500_v59, %v1498_v57 }
  0xa3   :  { %1168 = vmatmul.msk.bf16.gmra.mxu1 %vm176_vm1, %v133_v60  ;;  %1170 = vmatmul.msk.bf16.gmra.mxu2 %vm176_vm1, %v133_v60 }
 0x110   :  { %v192_v0 = vpop.f32.mrf.mxu1 }
 0x111   :  { %v1519_v3 = vadd.f32 %v192_v0, %v1511_v63 }
 0x113   :  { %v259_v7 = vmul.f32 %v1506_v61, %v1519_v3  ;;  %v260_v8 = vmul.f32 %v1521_v4, %v1519_v3  ;;  %v257_v9 = vmul.f32 %v1508_v62, %v1519_v3  ;;  %v258_v10 = vmul.f32 %v1523_v5, %v1519_v3 }
 0x114   :  { %v256_v46 = vmul.f32 %v1545_v21, %v1519_v3  ;;  %v255_v47 = vmul.f32 %v1516_v2, %v1519_v3  ;;  %v254_v48 = vmul.f32 %v232_v34, %v1519_v3  ;;  %v253_v51 = vmul.f32 %v230_v41, %v1519_v3 }
 0x115   :  { %v273_v12 = vpack.c.bf16 %v260_v8, %v259_v7  ;;  %v272_v13 = vpack.c.bf16 %v258_v10, %v257_v9 }
 0x116   :  { %v211_v11 = vpop.f32.mrf.mxu2  ;;  %v271_v55 = vpack.c.bf16 %v256_v46, %v255_v47  ;;  %v270_v56 = vpack.c.bf16 %v254_v48, %v253_v51  ;;  %v1644_v46 = vld [vmem:[%s2003_s5 + $0x10] sm:$0xff]  ;;  %v1650_v47 = vld [vmem:[%s2003_s5 + $0x8] sm:$0xff] }
 0x117   :  { %v212_v14 = vadd.f32 %v211_v11, %v1525_v6  ;;  %284 = vrot.lane.b32.xlu2 %v273_v12, %s1313_s19  ;;  %282 = vrot.lane.b32.xlu1 %v272_v13, %s1313_s19 }
 0x118   :  { %v194_v15 = vpop.f32.mrf.mxu1 }
 0x119   :  { %v1539_v16 = vadd.f32 %v194_v15, %v1511_v63  ;;  %v267_v17 = vmul.f32 %v212_v14, %v1419_v32  ;;  %v268_v18 = vmul.f32 %v212_v14, %v1433_v35  ;;  %v265_v19 = vmul.f32 %v212_v14, %v1424_v33 }
 0x11a   :  { %v266_v20 = vmul.f32 %v212_v14, %v1438_v36  ;;  %v263_v44 = vmul.f32 %v212_v14, %v1461_v39  ;;  %v264_v45 = vmul.f32 %v212_v14, %v1474_v43  ;;  %v261_v53 = vmul.f32 %v212_v14, %v1452_v38 }
 0x11b   :  { %v349_v22 = vpack.c.bf16 %v268_v18, %v267_v17  ;;  %v372_v23 = vmul.f32 %v1506_v61, %v1539_v16  ;;  %v373_v24 = vmul.f32 %v1521_v4, %v1539_v16  ;;  %v370_v25 = vmul.f32 %v1508_v62, %v1539_v16 }
 0x11c   :  { %v371_v26 = vmul.f32 %v1523_v5, %v1539_v16  ;;  %v368_v27 = vmul.f32 %v1516_v2, %v1539_v16  ;;  %v369_v28 = vmul.f32 %v1545_v21, %v1539_v16  ;;  %v348_v42 = vpack.c.bf16 %v266_v20, %v265_v19 }
 0x11d   :  { %357 = vmatpush.bf16.msrb.mxu1 %v349_v22  ;;  %v386_v29 = vpack.c.bf16 %v373_v24, %v372_v23  ;;  %v347_v52 = vpack.c.bf16 %v264_v45, %v263_v44  ;;  %v262_v54 = vmul.f32 %v212_v14, %v1447_v37  ;;  %v366_v60 = vmul.f32 %v230_v41, %v1539_v16  ;;  %v1638_v45 = vld [vmem:[%s2003_s5 + $0x18] sm:$0xff] }
 0x11e   :  { %v385_v30 = vpack.c.bf16 %v371_v26, %v370_v25  ;;  %v384_v31 = vpack.c.bf16 %v369_v28, %v368_v27  ;;  %v367_v0 = vmul.f32 %v232_v34, %v1539_v16 }
 0x11f   :  { %397 = vrot.lane.b32.xlu0 %v386_v29, %s1313_s19  ;;  %v346_v58 = vpack.c.bf16 %v262_v54, %v261_v53 }
 0x120   :  { %395 = vrot.lane.b32.xlu2 %v385_v30, %s1313_s19  ;;  %393 = vrot.lane.b32.xlu1 %v384_v31, %s1313_s19  ;;  %v197_v1 = vpop.f32.mrf.mxu1  ;;  %v383_v8 = vpack.c.bf16 %v367_v0, %v366_v60  ;;  %v1613_v30 = vld [vmem:[%s2003_s5 + $0x38] sm:$0xff]  ;;  %v1619_v31 = vld [vmem:[%s2003_s5 + $0x30] sm:$0xff] }
 0x121   :  { %358 = vmatpush.bf16.msrb.mxu1 %v348_v42  ;;  %v1577_v7 = vadd.f32 %v197_v1, %v1511_v63  ;;  %444 = vmatpush.msra.mxu3 %v1613_v30  ;;  %v1631_v42 = vld [vmem:[%s2003_s5 + $0x20] sm:$0xff] }
 0x123   :  { %v485_v9 = vmul.f32 %v1506_v61, %v1577_v7  ;;  %v486_v10 = vmul.f32 %v1521_v4, %v1577_v7  ;;  %v483_v12 = vmul.f32 %v1508_v62, %v1577_v7  ;;  %v484_v13 = vmul.f32 %v1523_v5, %v1577_v7  ;;  %445 = vmatpush.msra.mxu3 %v1619_v31 }
 0x124   :  { %v481_v15 = vmul.f32 %v1516_v2, %v1577_v7  ;;  %v482_v17 = vmul.f32 %v1545_v21, %v1577_v7  ;;  %v479_v25 = vmul.f32 %v230_v41, %v1577_v7  ;;  %v480_v26 = vmul.f32 %v232_v34, %v1577_v7 }
 0x125   :  { %359 = vmatpush.bf16.msrb.mxu1 %v347_v52  ;;  %v499_v11 = vpack.c.bf16 %v486_v10, %v485_v9  ;;  %v498_v14 = vpack.c.bf16 %v484_v13, %v483_v12  ;;  %v1657_v52 = vld [vmem:[%s2003_s5] sm:$0xff]  ;;  %v213_v9 = vpop.f32.mrf.mxu2  ;;  %v269_v10 = vpack.c.bf16 %v1519_v3, %v1519_v3 }
 0x126   :  { %v497_v20 = vpack.c.bf16 %v482_v17, %v481_v15  ;;  %v496_v27 = vpack.c.bf16 %v480_v26, %v479_v25  ;;  %v214_v12 = vadd.f32 %v213_v9, %v1525_v6  ;;  %v382_v17 = vpack.c.bf16 %v1539_v16, %v1539_v16 }
 0x127   :  { %280 = vrot.lane.b32.xlu0 %v271_v55, %s1313_s19 }
 0x128   :  { %278 = vrot.lane.b32.xlu2 %v270_v56, %s1313_s19  ;;  %v199_v18 = vpop.f32.mrf.mxu1  ;;  %v380_v15 = vmul.f32 %v214_v12, %v1419_v32  ;;  %v381_v3 = vmul.f32 %v214_v12, %v1433_v35 }
 0x129   :  { %360 = vmatpush.bf16.msrb.mxu1 %v346_v58  ;;  %v1595_v19 = vadd.f32 %v199_v18, %v1511_v63 }
 0x12b   :  { %v598_v22 = vmul.f32 %v1506_v61, %v1595_v19  ;;  %v599_v23 = vmul.f32 %v1521_v4, %v1595_v19  ;;  %v592_v63 = vmul.f32 %v230_v41, %v1595_v19  ;;  %v593_v28 = vmul.f32 %v232_v34, %v1595_v19  ;;  %v1625_v34 = vld [vmem:[%s2003_s5 + $0x28] sm:$0xff] }
 0x12c   :  { %446 = vmatpush.msra.mxu3 %v1625_v34 }
 0x12d   :  { %v612_v24 = vpack.c.bf16 %v599_v23, %v598_v22  ;;  %v609_v29 = vpack.c.bf16 %v593_v28, %v592_v63  ;;  %v462_v22 = vpack.c.bf16 %v381_v3, %v380_v15  ;;  %v378_v23 = vmul.f32 %v214_v12, %v1424_v33  ;;  %v216_v25 = vpop.f32.mrf.mxu2 }
 0x12e   :  { %447 = vmatpush.msra.mxu3 %v1631_v42  ;;  %v217_v26 = vadd.f32 %v216_v25, %v1525_v6  ;;  %v597_v3 = vmul.f32 %v1523_v5, %v1595_v19 }
 0x12f   :  { %391 = vrot.lane.b32.xlu0 %v383_v8, %s1313_s19 }
 0x130   :  { %448 = vmatpush.msra.mxu3 %v1638_v45  ;;  %v493_v16 = vmul.f32 %v217_v26, %v1419_v32  ;;  %v491_v63 = vmul.f32 %v217_v26, %v1424_v33  ;;  %v492_v28 = vmul.f32 %v217_v26, %v1438_v36 }
 0x132   :  { %449 = vmatpush.msra.mxu3 %v1644_v46 }
 0x134   :  { %450 = vmatpush.msra.mxu3 %v1650_v47 }
 0x136   :  { %451 = vmatpush.msra.mxu3 %v1657_v52 }
 0x137   :  { %510 = vrot.lane.b32.xlu0 %v499_v11, %s1313_s19 }
 0x13f   :  { %508 = vrot.lane.b32.xlu0 %v498_v14, %s1313_s19 }
 0x147   :  { %506 = vrot.lane.b32.xlu0 %v497_v20, %s1313_s19 }
 0x14f   :  { %623 = vrot.lane.b32.xlu0 %v612_v24, %s1313_s19  ;;  %v379_v24 = vmul.f32 %v214_v12, %v1438_v36 }
 0x157   :  { %504 = vrot.lane.b32.xlu0 %v496_v27, %s1313_s19  ;;  %v494_v27 = vmul.f32 %v217_v26, %v1433_v35 }
 0x15f   :  { %617 = vrot.lane.b32.xlu0 %v609_v29, %s1313_s19  ;;  %v461_v29 = vpack.c.bf16 %v379_v24, %v378_v23 }
 0x171   :  { %v285_v61 = vpop.permute.xlu2 %284 }
 0x172   :  { %v299_v4 = vsel %vm176_vm1, %v285_v61, 0  ;;  %v376_v61 = vmul.f32 %v214_v12, %v1461_v39 }
 0x173   :  { %305 = vmatpush.bf16.xpose.msrb.mxu0 %v299_v4  ;;  %v377_v4 = vmul.f32 %v214_v12, %v1474_v43 }
 0x17a   :  { %v396_v53 = vpop.permute.xlu2 %395 }
 0x17b   :  { %v409_v56 = vsel %vm176_vm1, %v396_v53, 0  ;;  %v490_v53 = vmul.f32 %v217_v26, %v1474_v43 }
 0x182   :  { %v279_v58 = vpop.permute.xlu2 %278 }
 0x183   :  { %v290_v1 = vsel %vm176_vm1, %v279_v58, 0  ;;  %v375_v58 = vmul.f32 %v214_v12, %v1447_v37 }
 0x189   :  { %v283_v41 = vpop.permute.xlu1 %282 }
 0x18a   :  { %v296_v44 = vsel %vm176_vm1, %v283_v41, 0  ;;  %v575_v41 = vpack.c.bf16 %v494_v27, %v493_v16 }
 0x18b   :  { %306 = vmatpush.bf16.xpose.msrb.mxu0 %v296_v44 }
 0x18c   :  { %583 = vmatpush.bf16.msrb.mxu3 %v575_v41 }
 0x191   :  { %v398_v48 = vpop.permute.xlu0 %397 }
 0x192   :  { %v412_v51 = vsel %vm176_vm1, %v398_v48, 0  ;;  %v394_v60 = vpop.permute.xlu1 %393  ;;  %v574_v48 = vpack.c.bf16 %v492_v28, %v491_v63 }
 0x193   :  { %418 = vmatpush.bf16.xpose.msrb.mxu2 %v412_v51  ;;  %v406_v8 = vsel %vm176_vm1, %v394_v60, 0  ;;  %v489_v51 = vmul.f32 %v217_v26, %v1461_v39 }
 0x194   :  { %584 = vmatpush.bf16.msrb.mxu3 %v574_v48 }
 0x195   :  { %v573_v60 = vpack.c.bf16 %v490_v53, %v489_v51 }
 0x198   :  { %585 = vmatpush.bf16.msrb.mxu3 %v573_v60 }
 0x199   :  { %v281_v54 = vpop.permute.xlu0 %280 }
 0x19a   :  { %v293_v55 = vsel %vm176_vm1, %v281_v54, 0 }
 0x19b   :  { %307 = vmatpush.bf16.xpose.msrb.mxu0 %v293_v55  ;;  %419 = vmatpush.bf16.xpose.msrb.mxu2 %v409_v56  ;;  %v460_v55 = vpack.c.bf16 %v377_v4, %v376_v61  ;;  %v374_v56 = vmul.f32 %v214_v12, %v1452_v38 }
 0x1a1   :  { %v392_v0 = vpop.permute.xlu0 %391 }
 0x1a2   :  { %v403_v14 = vsel %vm176_vm1, %v392_v0, 0  ;;  %v487_v0 = vmul.f32 %v217_v26, %v1452_v38 }
 0x1a3   :  { %308 = vmatpush.bf16.xpose.msrb.mxu0 %v290_v1  ;;  %420 = vmatpush.bf16.xpose.msrb.mxu2 %v406_v8  ;;  %v488_v1 = vmul.f32 %v217_v26, %v1447_v37  ;;  %v459_v8 = vpack.c.bf16 %v375_v58, %v374_v56 }
 0x1a9   :  { %v511_v11 = vpop.permute.xlu0 %510 }
 0x1aa   :  { %v525_v13 = vsel %vm176_vm1, %v511_v11, 0  ;;  %1171 = vmatmul.msk.bf16.vlgmr.msrb.gmra.mxu0 %vm176_vm1, %v269_v10  ;;  %v572_v10 = vpack.c.bf16 %v488_v1, %v487_v0  ;;  %v608_v0 = vpack.c.bf16 %v1595_v19, %v1595_v19  ;;  %v1197_v1 = vld [vmem:[%s1998_s2 + $0x80] sm:$0xf] }
 0x1ab   :  { %331 = vmatpush.msra.mxu0 %v1613_v30  ;;  %421 = vmatpush.bf16.xpose.msrb.mxu2 %v403_v14 }
 0x1ac   :  { %531 = vmatpush.bf16.xpose.msra.mxu1 %v525_v13  ;;  %586 = vmatpush.bf16.msrb.mxu3 %v572_v10  ;;  %v1262_v10 = vld [vmem:[%s1998_s2 + $0x74] sm:$0xf0] }
 0x1ad   :  { %332 = vmatpush.msra.mxu0 %v1619_v31 }
 0x1af   :  { %333 = vmatpush.msra.mxu0 %v1625_v34 }
 0x1b1   :  { %334 = vmatpush.msra.mxu0 %v1631_v42  ;;  %v509_v18 = vpop.permute.xlu0 %508 }
 0x1b2   :  { %v522_v20 = vsel %vm176_vm1, %v509_v18, 0  ;;  %1174 = vmatmul.msk.bf16.vlgmr.msrb.gmra.mxu2 %vm176_vm1, %v382_v17 }
 0x1b3   :  { %557 = vmatpush.msra.mxu2 %v1613_v30  ;;  %335 = vmatpush.msra.mxu0 %v1638_v45 }
 0x1b4   :  { %532 = vmatpush.bf16.xpose.msra.mxu1 %v522_v20 }
 0x1b5   :  { %558 = vmatpush.msra.mxu2 %v1619_v31  ;;  %336 = vmatpush.msra.mxu0 %v1644_v46 }
 0x1b7   :  { %559 = vmatpush.msra.mxu2 %v1625_v34  ;;  %337 = vmatpush.msra.mxu0 %v1650_v47 }
 0x1b9   :  { %338 = vmatpush.msra.mxu0 %v1657_v52  ;;  %560 = vmatpush.msra.mxu2 %v1631_v42  ;;  %v507_v44 = vpop.permute.xlu0 %506 }
 0x1ba   :  { %v519_v54 = vsel %vm176_vm1, %v507_v44, 0 }
 0x1bb   :  { %470 = vmatpush.bf16.msrb.mxu0 %v462_v22  ;;  %561 = vmatpush.msra.mxu2 %v1638_v45 }
 0x1bc   :  { %533 = vmatpush.bf16.xpose.msra.mxu1 %v519_v54 }
 0x1bd   :  { %562 = vmatpush.msra.mxu2 %v1644_v46 }
 0x1bf   :  { %471 = vmatpush.bf16.msrb.mxu0 %v461_v29  ;;  %563 = vmatpush.msra.mxu2 %v1650_v47 }
 0x1c1   :  { %564 = vmatpush.msra.mxu2 %v1657_v52  ;;  %v624_v9 = vpop.permute.xlu0 %623 }
 0x1c3   :  { %472 = vmatpush.bf16.msrb.mxu0 %v460_v55  ;;  %670 = vmatpush.msrb.mxu2 %v1613_v30 }
 0x1c5   :  { %671 = vmatpush.msrb.mxu2 %v1619_v31 }
 0x1c7   :  { %473 = vmatpush.bf16.msrb.mxu0 %v459_v8  ;;  %672 = vmatpush.msrb.mxu2 %v1625_v34  ;;  %v218_v34 = vpop.f32.mrf.mxu2  ;;  %v1193_v8 = vld [vmem:[%s1998_s2 + $0x70] sm:$0xf] }
 0x1c9   :  { %673 = vmatpush.msrb.mxu2 %v1631_v42  ;;  %v505_v11 = vpop.permute.xlu0 %504 }
 0x1ca   :  { %v516_v30 = vsel %vm176_vm1, %v505_v11, 0  ;;  %v1189_v11 = vld [vmem:[%s1998_s2 + $0x60] sm:$0xf] }
 0x1cb   :  { %674 = vmatpush.msrb.mxu2 %v1638_v45  ;;  %534 = vmatpush.bf16.xpose.msra.mxu1 %v516_v30  ;;  %v594_v45 = vmul.f32 %v1516_v2, %v1595_v19  ;;  %v1261_v30 = vld [vmem:[%s1998_s2 + $0x64] sm:$0xf0] }
 0x1cd   :  { %675 = vmatpush.msrb.mxu2 %v1644_v46  ;;  %v595_v46 = vmul.f32 %v1545_v21, %v1595_v19  ;;  %v638_v21 = vsel %vm176_vm1, %v624_v9, 0 }
 0x1cf   :  { %676 = vmatpush.msrb.mxu2 %v1650_v47  ;;  %v610_v15 = vpack.c.bf16 %v595_v46, %v594_v45 }
 0x1d1   :  { %677 = vmatpush.msrb.mxu2 %v1657_v52  ;;  %v596_v52 = vmul.f32 %v1508_v62, %v1595_v19  ;;  %v219_v62 = vadd.f32 %v218_v34, %v1525_v6  ;;  %v1194_v19 = vor.u32 %v1262_v10, %v1193_v8  ;;  %v1260_v34 = vld [vmem:[%s1998_s2 + $0x54] sm:$0xf0] }
 0x1d3   :  { %v611_v17 = vpack.c.bf16 %v597_v3, %v596_v52  ;;  %v606_v5 = vmul.f32 %v219_v62, %v1419_v32  ;;  %v607_v26 = vmul.f32 %v219_v62, %v1433_v35  ;;  %v604_v29 = vmul.f32 %v219_v62, %v1424_v33 }
 0x1d4   :  { %v605_v61 = vmul.f32 %v219_v62, %v1438_v36  ;;  %v602_v41 = vmul.f32 %v219_v62, %v1461_v39  ;;  %v603_v32 = vmul.f32 %v219_v62, %v1474_v43  ;;  %v600_v48 = vmul.f32 %v219_v62, %v1452_v38  ;;  %v618_v36 = vpop.permute.xlu0 %617 }
 0x1d5   :  { %v688_v28 = vpack.c.bf16 %v607_v26, %v606_v5  ;;  %v601_v33 = vmul.f32 %v219_v62, %v1447_v37  ;;  %v629_v53 = vsel %vm176_vm1, %v618_v36, 0  ;;  %v495_v38 = vpack.c.bf16 %v1577_v7, %v1577_v7  ;;  %v1263_v7 = vld [vmem:[%s1998_s2 + $0x84] sm:$0xf0] }
 0x1d6   :  { %v687_v4 = vpack.c.bf16 %v605_v61, %v604_v29  ;;  %v686_v44 = vpack.c.bf16 %v603_v32, %v602_v41  ;;  %v1198_v9 = vor.u32 %v1263_v7, %v1197_v1  ;;  %v1314_v41 = vmov 64.0  }
 0x1d7   :  { %v685_v51 = vpack.c.bf16 %v601_v33, %v600_v48 }
 0x227   :  { %v310_v31 = vpop.f32.mrf.mxu0 }
 0x228   :  { %v314_v12 = vsel %vm176_vm1, %v310_v31, -inf }
 0x229   :  { %315 = vmax.xlane.f32.xlu1 %v314_v12  ;;  %v1185_v12 = vld [vmem:[%s1998_s2 + $0x50] sm:$0xf] }
 0x22f   :  { %v312_v13 = vpop.f32.mrf.mxu0 }
 0x230   :  { %v1186_v13 = vor.u32 %v1260_v34, %v1185_v12 }
 0x235   :  { %v423_v42 = vpop.f32.mrf.mxu2 }
 0x236   :  { %v427_v14 = vsel %vm176_vm1, %v423_v42, -inf }
 0x237   :  { %428 = vmax.xlane.f32.xlu2 %v427_v14 }
 0x23d   :  { %v425_v47 = vpop.f32.mrf.mxu2 }
 0x242   :  { %619 = vrot.lane.b32.xlu1 %v610_v15, %s1313_s19 }
 0x24f   :  { %621 = vrot.lane.b32.xlu2 %v611_v17, %s1313_s19 }
 0x29c   :  { %v316_v18 = vpop.xlane.xlu1 %315 }
 0x29d   :  { %v317_v20 = vsub.f32 %v310_v31, %v316_v18  ;;  %v1190_v31 = vor.u32 %v1261_v30, %v1189_v11 }
 0x29f   :  { %v318_v22 = vmul.f32 1.442695, %v317_v20 }
 0x2a1   :  { %1278 = vpow2.f32 %v318_v22 }
 0x2a7   :  { %v1279_v2 = vpop.eup %1278 }
 0x2a8   :  { %1172 = vmatmul.msk.f32.vlgmr.msra.gmra.mxu0 %vm176_vm1, %v1279_v2 }
 0x2a9   :  { %644 = vmatpush.bf16.xpose.msra.mxu0 %v638_v21 }
 0x2aa   :  { %v429_v23 = vpop.xlane.xlu2 %428 }
 0x2ab   :  { %v430_v24 = vsub.f32 %v423_v42, %v429_v23 }
 0x2ad   :  { %v431_v25 = vmul.f32 1.442695, %v430_v24  ;;  %v707_v24 = vperm.slane %v1466_v40, 2 }
 0x2af   :  { %1280 = vpow2.f32 %v431_v25 }
 0x2b2   :  { %v622_v16 = vpop.permute.xlu2 %621 }
 0x2b3   :  { %v635_v27 = vsel %vm176_vm1, %v622_v16, 0 }
 0x2b4   :  { %645 = vmatpush.bf16.xpose.msra.mxu0 %v635_v27  ;;  %v620_v6 = vpop.permute.xlu1 %619 }
 0x2b5   :  { %v1281_v63 = vpop.eup %1280  ;;  %v632_v35 = vsel %vm176_vm1, %v620_v6, 0 }
 0x2b6   :  { %1175 = vmatmul.msk.f32.vlgmr.msra.gmra.mxu3 %vm176_vm1, %v1281_v63 }
 0x2b7   :  { %696 = vmatpush.bf16.msra.mxu3 %v688_v28 }
 0x2bb   :  { %697 = vmatpush.bf16.msra.mxu3 %v687_v4 }
 0x2bc   :  { %646 = vmatpush.bf16.xpose.msra.mxu0 %v632_v35 }
 0x2bf   :  { %698 = vmatpush.bf16.msra.mxu3 %v686_v44 }
 0x2c3   :  { %699 = vmatpush.bf16.msra.mxu3 %v685_v51 }
 0x2c4   :  { %647 = vmatpush.bf16.xpose.msra.mxu0 %v629_v53 }
 0x325   :  { %v340_v54 = vpop.f32.mrf.mxu0 }
 0x326   :  { %1282 = vrcp.f32 %v340_v54 }
 0x32c   :  { %v1283_v39 = vpop.eup %1282 }
 0x32d   :  { %v344_v43 = vmul.f32 %v1283_v39, %v1279_v2 }
 0x32f   :  { %v345_v55 = vpack.c.bf16 %v344_v43, %v344_v43 }
 0x331   :  { %1173 = vmatmul.msk.bf16.vlgmr.msrb.gmra.mxu1 %vm176_vm1, %v345_v55 }
 0x332   :  { %742 = vmatpush.bf16.msrb.mxu1 %v1198_v9 }
 0x336   :  { %743 = vmatpush.bf16.msrb.mxu1 %v1194_v19 }
 0x339   :  { %v453_v56 = vpop.f32.mrf.mxu3 }
 0x33a   :  { %1284 = vrcp.f32 %v453_v56  ;;  %744 = vmatpush.bf16.msrb.mxu1 %v1190_v31 }
 0x33e   :  { %745 = vmatpush.bf16.msrb.mxu1 %v1186_v13 }
 0x340   :  { %v1285_v37 = vpop.eup %1284 }
 0x341   :  { %v457_v58 = vmul.f32 %v1285_v37, %v1281_v63  ;;  %1177 = vmatmul.msk.bf16.vlgmr.msra.gmra.mxu1 %vm176_vm1, %v495_v38 }
 0x343   :  { %v458_v60 = vpack.c.bf16 %v457_v58, %v457_v58 }
 0x345   :  { %1176 = vmatmul.msk.bf16.vlgmr.msrb.gmra.mxu0 %vm176_vm1, %v458_v60 }
 0x355   :  { %1180 = vmatmul.msk.bf16.vlgmr.msra.gmra.mxu0 %vm176_vm1, %v608_v0 }
 0x3ae   :  { %v362_v42 = vpop.f32.mrf.mxu1 }
 0x3b6   :  { %v364_v14 = vpop.f32.mrf.mxu1 }
 0x3be   :  { %v536_v45 = vpop.f32.mrf.mxu1 }
 0x3bf   :  { %v540_v46 = vsel %vm176_vm1, %v536_v45, -inf }
 0x3c0   :  { %541 = vmax.xlane.f32.xlu0 %v540_v46 }
 0x3c2   :  { %v475_v47 = vpop.f32.mrf.mxu0 }
 0x3c3   :  { %v705_v15 = vpack.c.bf16 %v475_v47, %v362_v42 }
 0x3c5   :  { %1199 = vmatmul.msk.bf16.vlgmr.msrb.gmra.mxu1 %vm176_vm1, %v705_v15 }
 0x3c6   :  { %v538_v52 = vpop.f32.mrf.mxu1 }
 0x3ca   :  { %v477_v3 = vpop.f32.mrf.mxu0 }
 0x3cb   :  { %v1215_v3 = vld [vmem:[%s1998_s2 + $0xc0] sm:$0xf] }
 0x3d2   :  { %v649_v17 = vpop.f32.mrf.mxu0 }
 0x3d3   :  { %v653_v18 = vsel %vm176_vm1, %v649_v17, -inf }
 0x3d4   :  { %654 = vmax.xlane.f32.xlu2 %v653_v18  ;;  %v1211_v18 = vld [vmem:[%s1998_s2 + $0xb0] sm:$0xf] }
 0x3da   :  { %v651_v20 = vpop.f32.mrf.mxu0 }
 0x3db   :  { %v1266_v20 = vld [vmem:[%s1998_s2 + $0xb4] sm:$0xf0] }
 0x433   :  { %v542_v22 = vpop.xlane.xlu0 %541 }
 0x434   :  { %v543_v2 = vsub.f32 %v536_v45, %v542_v22  ;;  %v1212_v22 = vor.u32 %v1266_v20, %v1211_v18 }
 0x436   :  { %v544_v21 = vmul.f32 1.442695, %v543_v2 }
 0x438   :  { %1286 = vpow2.f32 %v544_v21 }
 0x43e   :  { %v1287_v23 = vpop.eup %1286 }
 0x43f   :  { %1178 = vmatmul.msk.f32.vlgmr.msra.gmra.mxu2 %vm176_vm1, %v1287_v23 }
 0x442   :  { %v747_v62 = vpop.f32.mrf.mxu1 }
 0x443   :  { %v748_v25 = vadd.f32 %v747_v62, %v707_v24  ;;  %v1265_v62 = vld [vmem:[%s1998_s2 + $0xa4] sm:$0xf0] }
 0x445   :  { %v757_v5 = vadd.f32 %v748_v25, %v1484_v49 }
 0x447   :  { %v655_v26 = vpop.xlane.xlu2 %654  ;;  %v761_v16 = vsel %vm176_vm1, %v757_v5, 0.0 }
 0x448   :  { %v656_v27 = vsub.f32 %v649_v17, %v655_v26  ;;  %762 = vadd.xlane.f32.xlu1 %v761_v16  ;;  %v1267_v17 = vld [vmem:[%s1998_s2 + $0xc4] sm:$0xf0]  ;;  %v1203_v26 = vld [vmem:[%s1998_s2 + $0x90] sm:$0xf]  ;;  %v1264_v16 = vld [vmem:[%s1998_s2 + $0x94] sm:$0xf0] }
 0x44a   :  { %v657_v63 = vmul.f32 1.442695, %v656_v27  ;;  %v749_v28 = vpop.f32.mrf.mxu1 }
 0x44b   :  { %v750_v29 = vadd.f32 %v749_v28, %v707_v24  ;;  %v1204_v28 = vor.u32 %v1264_v16, %v1203_v26  ;;  %v1270_v26 = vld [vmem:[%s1998_s2 + $0xf4] sm:$0xf0] }
 0x44c   :  { %1288 = vpow2.f32 %v657_v63 }
 0x44d   :  { %v758_v61 = vadd.f32 %v750_v29, %v1486_v50  ;;  %1290 = vrcp.f32 %v1314_v41 }
 0x44f   :  { %v764_v6 = vsel %vm176_vm1, %v758_v61, 0.0 }
 0x450   :  { %765 = vadd.xlane.f32.xlu0 %v764_v6 }
 0x452   :  { %v1289_v4 = vpop.eup %1288 }
 0x453   :  { %1181 = vmatmul.msk.f32.vlgmr.msrb.gmra.mxu2 %vm176_vm1, %v1289_v4  ;;  %v1291_v49 = vpop.eup %1290 }
 0x454   :  { %v774_v32 = vmul.f32 64.0, %v1291_v49  ;;  %vm778_vm2 = vweird.f32 %v1291_v49 }
 0x456   :  { %v775_v35 = vsub.f32 1.0, %v774_v32 }
 0x458   :  { %v776_v44 = vmul.f32 %v1291_v49, %v775_v35 }
 0x45a   :  { %v777_v48 = vadd.f32 %v1291_v49, %v776_v44 }
 0x45c   :  { %v1786_v33 = vsel %vm778_vm2, %v1291_v49, %v777_v48 }
 0x4bb   :  { %v763_v36 = vpop.xlane.xlu1 %762 }
 0x4bc   :  { %v780_v51 = vmul.f32 %v1786_v33, %v763_v36 }
 0x4be   :  { %v1789_v50 = vsub.f32 %v757_v5, %v780_v51 }
 0x4c0   :  { %v788_v53 = vmul.f32 %v1789_v50, %v1789_v50 }
 0x4c2   :  { %v566_v54 = vpop.f32.mrf.mxu2  ;;  %v792_v39 = vsel %vm176_vm1, %v788_v53, 0.0 }
 0x4c3   :  { %1292 = vrcp.f32 %v566_v54  ;;  %793 = vadd.xlane.f32.xlu1 %v792_v39  ;;  %v766_v10 = vpop.xlane.xlu0 %765 }
 0x4c4   :  { %v781_v11 = vmul.f32 %v1786_v33, %v766_v10 }
 0x4c6   :  { %v1799_v12 = vsub.f32 %v758_v61, %v781_v11  ;;  %v1275_v11 = vld [vmem:[%s1998_s2 + $0x144] sm:$0xf0] }
 0x4c8   :  { %v789_v14 = vmul.f32 %v1799_v12, %v1799_v12 }
 0x4c9   :  { %v1293_v43 = vpop.eup %1292 }
 0x4ca   :  { %v570_v55 = vmul.f32 %v1293_v43, %v1287_v23  ;;  %v795_v47 = vsel %vm176_vm1, %v789_v14, 0.0 }
 0x4cc   :  { %v571_v56 = vpack.c.bf16 %v570_v55, %v570_v55 }
 0x4ce   :  { %1179 = vmatmul.msk.bf16.vlgmr.msrb.gmra.mxu3 %vm176_vm1, %v571_v56 }
 0x4d6   :  { %v679_v38 = vpop.f32.mrf.mxu2 }
 0x4d7   :  { %1294 = vrcp.f32 %v679_v38 }
 0x4dd   :  { %v1295_v37 = vpop.eup %1294 }
 0x4de   :  { %v683_v58 = vmul.f32 %v1295_v37, %v1289_v4  ;;  %v1846_v37 = vperm.slane %v1466_v40, 3 }
 0x4e0   :  { %v684_v60 = vpack.c.bf16 %v683_v58, %v683_v58 }
 0x4e2   :  { %1182 = vmatmul.msk.bf16.vlgmr.msra.gmra.mxu3 %vm176_vm1, %v684_v60 }
 0x536   :  { %v794_v15 = vpop.xlane.xlu1 %793 }
 0x551   :  { %v588_v0 = vpop.f32.mrf.mxu3 }
 0x559   :  { %v590_v1 = vpop.f32.mrf.mxu3 }
 0x55a   :  { %v1850_v1 = vperm.slane %v1466_v40, 4  ;;  %v1249_v40 = vld [vmem:[%s1998_s2 + $0x140] sm:$0xf] }
 0x565   :  { %v701_v7 = vpop.f32.mrf.mxu3 }
 0x566   :  { %v706_v8 = vpack.c.bf16 %v701_v7, %v588_v0 }
 0x568   :  { %1200 = vmatmul.msk.bf16.gmra.mxu1 %vm176_vm1, %v706_v8 }
 0x56d   :  { %v703_v9 = vpop.f32.mrf.mxu3 }
 0x5e5   :  { %v752_v19 = vpop.f32.mrf.mxu1 }
 0x5e6   :  { %v753_v30 = vadd.f32 %v752_v19, %v707_v24 }
 0x5e8   :  { %v759_v31 = vadd.f32 %v753_v30, %v1498_v57  ;;  %v804_v57 = vmul.f32 %v794_v15, %v1786_v33  ;;  %v1245_v30 = vld [vmem:[%s1998_s2 + $0x130] sm:$0xf] }
 0x5ea   :  { %v767_v34 = vsel %vm176_vm1, %v759_v31, 0.0  ;;  %v808_v52 = vadd.f32 1e-05, %v804_v57 }
 0x5eb   :  { %768 = vadd.xlane.f32.xlu0 %v767_v34  ;;  %v1274_v34 = vld [vmem:[%s1998_s2 + $0x134] sm:$0xf0] }
 0x5ec   :  { %1296 = vrsqrt.f32 %v808_v52  ;;  %vm818_vm4 = vweird.f32 %v808_v52 }
 0x5ed   :  { %v754_v13 = vpop.f32.mrf.mxu1 }
 0x5ee   :  { %v755_v42 = vadd.f32 %v754_v13, %v707_v24  ;;  %v1207_v24 = vld [vmem:[%s1998_s2 + $0xa0] sm:$0xf] }
 0x5ef   :  { %v1208_v5 = vor.u32 %v1265_v62, %v1207_v24 }
 0x5f0   :  { %v760_v45 = vadd.f32 %v755_v42, %v1500_v59  ;;  %v1216_v59 = vor.u32 %v1267_v17, %v1215_v3  ;;  %v1246_v42 = vor.u32 %v1274_v34, %v1245_v30 }
 0x5f2   :  { %v770_v46 = vsel %vm176_vm1, %v760_v45, 0.0  ;;  %903 = vmatpush.bf16.msra.mxu2 %v1216_v59  ;;  %v1297_v21 = vpop.eup %1296 }
 0x5f3   :  { %771 = vadd.xlane.f32.xlu2 %v770_v46  ;;  %796 = vadd.xlane.f32.xlu0 %v795_v47  ;;  %v813_v27 = vmul.f32 %v1297_v21, %v808_v52  ;;  %vm819_vm3 = vweird.f32 %v1297_v21  ;;  %v1273_v46 = vld [vmem:[%s1998_s2 + $0x124] sm:$0xf0]  ;;  %v1237_v47 = vld [vmem:[%s1998_s2 + $0x110] sm:$0xf]  ;;  %v1272_v52 = vld [vmem:[%s1998_s2 + $0x114] sm:$0xf0] }
 0x5f4   :  { %vm820_vm5 = vmor %vm818_vm4, %vm819_vm3  ;;  %v1238_v17 = vor.u32 %v1272_v52, %v1237_v47 }
 0x5f5   :  { %v814_v61 = vmul.f32 %v1297_v21, %v813_v27 }
 0x5f6   :  { %904 = vmatpush.bf16.msra.mxu2 %v1212_v22 }
 0x5f7   :  { %v815_v44 = vmul.f32 0.5, %v814_v61 }
 0x5f9   :  { %v816_v51 = vsub.f32 1.5, %v815_v44 }
 0x5fa   :  { %905 = vmatpush.bf16.msra.mxu2 %v1208_v5  ;;  %v1229_v5 = vld [vmem:[%s1998_s2 + $0xf0] sm:$0xf] }
 0x5fb   :  { %v817_v54 = vmul.f32 %v1297_v21, %v816_v51  ;;  %v1268_v51 = vld [vmem:[%s1998_s2 + $0xd4] sm:$0xf0] }
 0x5fd   :  { %v821_v55 = vsel %vm820_vm5, %v1297_v21, %v817_v54  ;;  %v1233_v21 = vld [vmem:[%s1998_s2 + $0x100] sm:$0xf] }
 0x5fe   :  { %906 = vmatpush.bf16.msra.mxu2 %v1204_v28  ;;  %v852_v58 = vmul.f32 %v821_v55, %v1789_v50  ;;  %v1230_v28 = vor.u32 %v1270_v26, %v1229_v5 }
 0x600   :  { %v857_v7 = vmul.f32 %v1846_v37, %v852_v58 }
 0x602   :  { %v1856_v10 = vadd.f32 %v1850_v1, %v857_v7 }
 0x65e   :  { %v769_v2 = vpop.xlane.xlu0 %768 }
 0x65f   :  { %v782_v23 = vmul.f32 %v1786_v33, %v769_v2 }
 0x661   :  { %v1827_v25 = vsub.f32 %v759_v31, %v782_v23  ;;  %v1271_v23 = vld [vmem:[%s1998_s2 + $0x104] sm:$0xf0] }
 0x662   :  { %v1234_v62 = vor.u32 %v1271_v23, %v1233_v21 }
 0x663   :  { %v790_v63 = vmul.f32 %v1827_v25, %v1827_v25 }
 0x665   :  { %v798_v29 = vsel %vm176_vm1, %v790_v63, 0.0 }
 0x666   :  { %v772_v6 = vpop.xlane.xlu2 %771  ;;  %799 = vadd.xlane.f32.xlu2 %v798_v29  ;;  %v797_v4 = vpop.xlane.xlu0 %796 }
 0x667   :  { %v783_v41 = vmul.f32 %v1786_v33, %v772_v6  ;;  %v805_v49 = vmul.f32 %v797_v4, %v1786_v33  ;;  %v1225_v4 = vld [vmem:[%s1998_s2 + $0xe0] sm:$0xf] }
 0x669   :  { %v1840_v32 = vsub.f32 %v760_v45, %v783_v41  ;;  %v809_v35 = vadd.f32 1e-05, %v805_v49  ;;  %v1241_v45 = vld [vmem:[%s1998_s2 + $0x120] sm:$0xf]  ;;  %v1269_v41 = vld [vmem:[%s1998_s2 + $0xe4] sm:$0xf0] }
 0x66a   :  { %v1242_v57 = vor.u32 %v1273_v46, %v1241_v45 }
 0x66b   :  { %1298 = vrsqrt.f32 %v809_v35  ;;  %v791_v48 = vmul.f32 %v1840_v32, %v1840_v32  ;;  %vm828_vm7 = vweird.f32 %v809_v35 }
 0x66d   :  { %v801_v36 = vsel %vm176_vm1, %v791_v48, 0.0 }
 0x66e   :  { %802 = vadd.xlane.f32.xlu1 %v801_v36  ;;  %v1221_v36 = vld [vmem:[%s1998_s2 + $0xd0] sm:$0xf] }
 0x671   :  { %v1299_v53 = vpop.eup %1298 }
 0x672   :  { %v823_v39 = vmul.f32 %v1299_v53, %v809_v35  ;;  %vm829_vm6 = vweird.f32 %v1299_v53  ;;  %v1226_v35 = vor.u32 %v1269_v41, %v1225_v4 }
 0x673   :  { %vm830_vm8 = vmor %vm828_vm7, %vm829_vm6 }
 0x674   :  { %v824_v43 = vmul.f32 %v1299_v53, %v823_v39 }
 0x676   :  { %v825_v56 = vmul.f32 0.5, %v824_v43 }
 0x678   :  { %v826_v38 = vsub.f32 1.5, %v825_v56 }
 0x67a   :  { %v827_v60 = vmul.f32 %v1299_v53, %v826_v38 }
 0x67c   :  { %v831_v0 = vsel %vm830_vm8, %v1299_v53, %v827_v60  ;;  %v1222_v53 = vor.u32 %v1268_v51, %v1221_v36  ;;  %v1924_v60 = vld [vmem:[%s2001_s3] sm:$0xff] }
 0x67d   :  { %v853_v8 = vmul.f32 %v831_v0, %v1799_v12  ;;  %v1250_v12 = vor.u32 %v1275_v11, %v1249_v40 }
 0x67f   :  { %v858_v9 = vmul.f32 %v1846_v37, %v853_v8  ;;  %972 = vmatpush.bf16.msrb.mxu3 %v1250_v12 }
 0x681   :  { %v1859_v19 = vadd.f32 %v1850_v1, %v858_v9 }
 0x683   :  { %v866_v50 = vpack.c.bf16 %v1859_v19, %v1856_v10  ;;  %973 = vmatpush.bf16.msrb.mxu3 %v1246_v42 }
 0x685   :  { %1217 = vmatmul.msk.bf16.vlgmr.msra.gmra.mxu2 %vm176_vm1, %v866_v50 }
 0x687   :  { %974 = vmatpush.bf16.msrb.mxu3 %v1242_v57 }
 0x68b   :  { %975 = vmatpush.bf16.msrb.mxu3 %v1238_v17 }
 0x68f   :  { %976 = vmatpush.bf16.msrb.mxu3 %v1234_v62 }
 0x693   :  { %977 = vmatpush.bf16.msrb.mxu3 %v1230_v28 }
 0x697   :  { %978 = vmatpush.bf16.msrb.mxu3 %v1226_v35 }
 0x69b   :  { %979 = vmatpush.bf16.msrb.mxu3 %v1222_v53 }
 0x6d9   :  { %v800_v31 = vpop.xlane.xlu2 %799 }
 0x6da   :  { %v806_v13 = vmul.f32 %v800_v31, %v1786_v33 }
 0x6dc   :  { %v810_v14 = vadd.f32 1e-05, %v806_v13  ;;  %v995_v13 = vperm.slane %v1924_v60, 6 }
 0x6de   :  { %1300 = vrsqrt.f32 %v810_v14  ;;  %vm838_vm10 = vweird.f32 %v810_v14 }
 0x6e1   :  { %v803_v15 = vpop.xlane.xlu1 %802 }
 0x6e2   :  { %v807_v3 = vmul.f32 %v803_v15, %v1786_v33 }
 0x6e4   :  { %v1301_v59 = vpop.eup %1300  ;;  %v811_v18 = vadd.f32 1e-05, %v807_v3 }
 0x6e5   :  { %v833_v20 = vmul.f32 %v1301_v59, %v810_v14  ;;  %vm839_vm9 = vweird.f32 %v1301_v59 }
 0x6e6   :  { %1302 = vrsqrt.f32 %v811_v18  ;;  %vm840_vm11 = vmor %vm838_vm10, %vm839_vm9  ;;  %vm848_vm13 = vweird.f32 %v811_v18  ;;  %vm1120_vm9 = vcmask 7168  }
 0x6e7   :  { %v834_v22 = vmul.f32 %v1301_v59, %v833_v20 }
 0x6e9   :  { %v835_v2 = vmul.f32 0.5, %v834_v22 }
 0x6eb   :  { %v836_v24 = vsub.f32 1.5, %v835_v2 }
 0x6ec   :  { %v1303_v16 = vpop.eup %1302 }
 0x6ed   :  { %v837_v27 = vmul.f32 %v1301_v59, %v836_v24  ;;  %v843_v63 = vmul.f32 %v1303_v16, %v811_v18  ;;  %vm849_vm12 = vweird.f32 %v1303_v16 }
 0x6ee   :  { %vm850_vm14 = vmor %vm848_vm13, %vm849_vm12 }
 0x6ef   :  { %v844_v29 = vmul.f32 %v1303_v16, %v843_v63  ;;  %v841_v61 = vsel %vm840_vm11, %v1301_v59, %v837_v27 }
 0x6f0   :  { %v854_v44 = vmul.f32 %v841_v61, %v1827_v25 }
 0x6f1   :  { %v845_v6 = vmul.f32 0.5, %v844_v29 }
 0x6f2   :  { %v859_v43 = vmul.f32 %v1846_v37, %v854_v44 }
 0x6f3   :  { %v846_v49 = vsub.f32 1.5, %v845_v6 }
 0x6f4   :  { %v864_v55 = vadd.f32 %v1850_v1, %v859_v43 }
 0x6f5   :  { %v847_v48 = vmul.f32 %v1303_v16, %v846_v49 }
 0x6f7   :  { %v851_v54 = vsel %vm850_vm14, %v1303_v16, %v847_v48 }
 0x6f8   :  { %v855_v39 = vmul.f32 %v851_v54, %v1840_v32  ;;  %v868_v32 = vperm.slane %v1924_v60, 5 }
 0x6fa   :  { %v860_v25 = vmul.f32 %v1846_v37, %v855_v39 }
 0x6fc   :  { %v865_v56 = vadd.f32 %v1850_v1, %v860_v25 }
 0x6fe   :  { %v867_v38 = vpack.c.bf16 %v865_v56, %v864_v55 }
 0x700   :  { %1218 = vmatmul.msk.bf16.gmra.mxu2 %vm176_vm1, %v867_v38 }
 0x708   :  { %v908_v58 = vpop.f32.mrf.mxu2 }
 0x709   :  { %v909_v0 = vadd.f32 %v908_v58, %v868_v32 }
 0x70b   :  { %v918_v9 = vmax.f32 %v909_v0, 0.0 }
 0x710   :  { %v910_v7 = vpop.f32.mrf.mxu2 }
 0x711   :  { %v911_v8 = vadd.f32 %v910_v7, %v868_v32 }
 0x713   :  { %v919_v37 = vmax.f32 %v911_v8, 0.0  ;;  %v68_v8 = vld [vmem:[%s2001_s3 + $0x10] sm:$0xff] }
 0x715   :  { %v922_v50 = vpack.c.bf16 %v919_v37, %v918_v9  ;;  %v1956_v9 = vperm.slane %v1924_v60, 7 }
 0x717   :  { %980 = vmatmul.bf16.vlgmr.msrb.gmra.mxu3 %v922_v50 }
 0x783   :  { %v913_v40 = vpop.f32.mrf.mxu2 }
 0x784   :  { %v914_v1 = vadd.f32 %v913_v40, %v868_v32 }
 0x786   :  { %v920_v31 = vmax.f32 %v914_v1, 0.0  ;;  %v1958_v1 = vperm.slane %v68_v8, 0 }
 0x78b   :  { %v915_v11 = vpop.f32.mrf.mxu2 }
 0x78c   :  { %v916_v30 = vadd.f32 %v915_v11, %v868_v32 }
 0x78e   :  { %v921_v12 = vmax.f32 %v916_v30, 0.0 }
 0x790   :  { %v923_v34 = vpack.c.bf16 %v921_v12, %v920_v31  ;;  %v1961_v31 = vperm.slane %v68_v8, 1 }
 0x792   :  { %985 = vmatmul.bf16.gmra.mxu3 %v923_v34 }
 0x79a   :  { %v981_v42 = vpop.f32.mrf.mxu3 }
 0x79b   :  { %v991_v14 = vadd.f32 %v981_v42, %v1856_v10 }
 0x79d   :  { %v996_v45 = vadd.f32 %v995_v13, %v991_v14 }
 0x79f   :  { %v1000_v46 = vsel %vm176_vm1, %v996_v45, 0.0 }
 0x7a0   :  { %1001 = vadd.xlane.f32.xlu0 %v1000_v46 }
 0x7a2   :  { %v983_v47 = vpop.f32.mrf.mxu3 }
 0x7a3   :  { %v992_v15 = vadd.f32 %v983_v47, %v1859_v19 }
 0x7a5   :  { %v997_v57 = vadd.f32 %v995_v13, %v992_v15 }
 0x7a7   :  { %v1003_v52 = vsel %vm176_vm1, %v997_v57, 0.0 }
 0x7a8   :  { %1004 = vadd.xlane.f32.xlu2 %v1003_v52 }
 0x813   :  { %v1002_v3 = vpop.xlane.xlu0 %1001 }
 0x814   :  { %v1012_v17 = vmul.f32 %v1002_v3, %v1786_v33 }
 0x815   :  { %v986_v59 = vpop.f32.mrf.mxu3 }
 0x816   :  { %v1016_v18 = vsub.f32 %v996_v45, %v1012_v17  ;;  %v993_v20 = vadd.f32 %v986_v59, %v864_v55 }
 0x818   :  { %v1020_v22 = vmul.f32 %v1016_v18, %v1016_v18  ;;  %v998_v2 = vadd.f32 %v995_v13, %v993_v20 }
 0x81a   :  { %v1024_v10 = vsel %vm176_vm1, %v1020_v22, 0.0  ;;  %v1006_v21 = vsel %vm176_vm1, %v998_v2, 0.0 }
 0x81b   :  { %1025 = vadd.xlane.f32.xlu2 %v1024_v10  ;;  %v1005_v23 = vpop.xlane.xlu2 %1004  ;;  %1007 = vadd.xlane.f32.xlu1 %v1006_v21 }
 0x81c   :  { %v1013_v19 = vmul.f32 %v1005_v23, %v1786_v33 }
 0x81d   :  { %v988_v24 = vpop.f32.mrf.mxu3 }
 0x81e   :  { %v1017_v62 = vsub.f32 %v997_v57, %v1013_v19  ;;  %v994_v5 = vadd.f32 %v988_v24, %v865_v56 }
 0x820   :  { %v1021_v26 = vmul.f32 %v1017_v62, %v1017_v62  ;;  %v999_v16 = vadd.f32 %v995_v13, %v994_v5  ;;  %v1115_v5 = vperm.slane %v68_v8, 2 }
 0x822   :  { %v1027_v27 = vsel %vm176_vm1, %v1021_v26, 0.0  ;;  %v1009_v63 = vsel %vm176_vm1, %v999_v16, 0.0 }
 0x823   :  { %1028 = vadd.xlane.f32.xlu1 %v1027_v27  ;;  %1010 = vadd.xlane.f32.xlu0 %v1009_v63 }
 0x88e   :  { %v1026_v28 = vpop.xlane.xlu2 %1025  ;;  %v1008_v29 = vpop.xlane.xlu1 %1007 }
 0x88f   :  { %v1036_v61 = vmul.f32 %v1026_v28, %v1786_v33  ;;  %v1014_v6 = vmul.f32 %v1008_v29, %v1786_v33 }
 0x891   :  { %v1040_v4 = vadd.f32 1e-05, %v1036_v61  ;;  %v1940_v41 = vsub.f32 %v998_v2, %v1014_v6 }
 0x893   :  { %1304 = vrsqrt.f32 %v1040_v4  ;;  %v1022_v49 = vmul.f32 %v1940_v41, %v1940_v41  ;;  %vm1050_vm0 = vweird.f32 %v1040_v4 }
 0x895   :  { %v1030_v35 = vsel %vm176_vm1, %v1022_v49, 0.0 }
 0x896   :  { %v1029_v44 = vpop.xlane.xlu1 %1028  ;;  %1031 = vadd.xlane.f32.xlu0 %v1030_v35  ;;  %v1011_v48 = vpop.xlane.xlu0 %1010 }
 0x897   :  { %v1037_v36 = vmul.f32 %v1029_v44, %v1786_v33  ;;  %v1015_v51 = vmul.f32 %v1011_v48, %v1786_v33 }
 0x899   :  { %v1305_v53 = vpop.eup %1304  ;;  %v1041_v54 = vadd.f32 1e-05, %v1037_v36  ;;  %v1947_v39 = vsub.f32 %v999_v16, %v1015_v51 }
 0x89a   :  { %v1045_v43 = vmul.f32 %v1305_v53, %v1040_v4  ;;  %vm1051_vm15 = vweird.f32 %v1305_v53 }
 0x89b   :  { %1306 = vrsqrt.f32 %v1041_v54  ;;  %v1023_v25 = vmul.f32 %v1947_v39, %v1947_v39  ;;  %vm1052_vm2 = vmor %vm1050_vm0, %vm1051_vm15  ;;  %vm1060_vm4 = vweird.f32 %v1041_v54 }
 0x89c   :  { %v1046_v55 = vmul.f32 %v1305_v53, %v1045_v43 }
 0x89d   :  { %v1033_v56 = vsel %vm176_vm1, %v1023_v25, 0.0 }
 0x89e   :  { %v1047_v38 = vmul.f32 0.5, %v1046_v55  ;;  %1034 = vadd.xlane.f32.xlu2 %v1033_v56 }
 0x8a0   :  { %v1048_v58 = vsub.f32 1.5, %v1047_v38 }
 0x8a1   :  { %v1307_v32 = vpop.eup %1306 }
 0x8a2   :  { %v1049_v0 = vmul.f32 %v1305_v53, %v1048_v58  ;;  %v1055_v7 = vmul.f32 %v1307_v32, %v1041_v54  ;;  %vm1061_vm3 = vweird.f32 %v1307_v32 }
 0x8a3   :  { %vm1062_vm5 = vmor %vm1060_vm4, %vm1061_vm3 }
 0x8a4   :  { %v1053_v37 = vsel %vm1052_vm2, %v1305_v53, %v1049_v0  ;;  %v1056_v50 = vmul.f32 %v1307_v32, %v1055_v7 }
 0x8a5   :  { %v1084_v40 = vmul.f32 %v1053_v37, %v1016_v18 }
 0x8a6   :  { %v1057_v11 = vmul.f32 0.5, %v1056_v50 }
 0x8a7   :  { %v1089_v30 = vmul.f32 %v1956_v9, %v1084_v40 }
 0x8a8   :  { %v1058_v12 = vsub.f32 1.5, %v1057_v11 }
 0x8a9   :  { %v1094_v34 = vadd.f32 %v1958_v1, %v1089_v30 }
 0x8aa   :  { %v1059_v13 = vmul.f32 %v1307_v32, %v1058_v12 }
 0x8ab   :  { %v1099_v60 = vmul.f32 %v1961_v31, %v1094_v34 }
 0x8ac   :  { %v1063_v42 = vsel %vm1062_vm5, %v1307_v32, %v1059_v13 }
 0x8ad   :  { %v1103_v14 = vsel %vm176_vm1, %v1099_v60, 0.0  ;;  %v1085_v45 = vmul.f32 %v1063_v42, %v1017_v62 }
 0x8ae   :  { %1104 = vadd.xlane.f32.xlu1 %v1103_v14 }
 0x8af   :  { %v1090_v46 = vmul.f32 %v1956_v9, %v1085_v45 }
 0x8b1   :  { %v1095_v47 = vadd.f32 %v1958_v1, %v1090_v46 }
 0x8b3   :  { %v1100_v15 = vmul.f32 %v1961_v31, %v1095_v47 }
 0x8b5   :  { %v1106_v57 = vsel %vm176_vm1, %v1100_v15, 0.0 }
 0x8b6   :  { %1107 = vadd.xlane.f32.xlu0 %v1106_v57 }
 0x909   :  { %v1032_v52 = vpop.xlane.xlu0 %1031 }
 0x90a   :  { %v1038_v3 = vmul.f32 %v1032_v52, %v1786_v33 }
 0x90c   :  { %v1042_v17 = vadd.f32 1e-05, %v1038_v3 }
 0x90e   :  { %1308 = vrsqrt.f32 %v1042_v17  ;;  %vm1070_vm7 = vweird.f32 %v1042_v17 }
 0x911   :  { %v1035_v59 = vpop.xlane.xlu2 %1034 }
 0x912   :  { %v1039_v18 = vmul.f32 %v1035_v59, %v1786_v33 }
 0x914   :  { %v1309_v20 = vpop.eup %1308  ;;  %v1043_v22 = vadd.f32 1e-05, %v1039_v18 }
 0x915   :  { %v1065_v2 = vmul.f32 %v1309_v20, %v1042_v17  ;;  %vm1071_vm6 = vweird.f32 %v1309_v20 }
 0x916   :  { %1310 = vrsqrt.f32 %v1043_v22  ;;  %vm1072_vm8 = vmor %vm1070_vm7, %vm1071_vm6  ;;  %vm1080_vm11 = vweird.f32 %v1043_v22 }
 0x917   :  { %v1066_v10 = vmul.f32 %v1309_v20, %v1065_v2 }
 0x919   :  { %v1067_v21 = vmul.f32 0.5, %v1066_v10 }
 0x91b   :  { %v1068_v23 = vsub.f32 1.5, %v1067_v21 }
 0x91c   :  { %v1311_v19 = vpop.eup %1310 }
 0x91d   :  { %v1069_v24 = vmul.f32 %v1309_v20, %v1068_v23  ;;  %v1075_v62 = vmul.f32 %v1311_v19, %v1043_v22  ;;  %vm1081_vm10 = vweird.f32 %v1311_v19 }
 0x91e   :  { %vm1082_vm12 = vmor %vm1080_vm11, %vm1081_vm10 }
 0x91f   :  { %v1073_v26 = vsel %vm1072_vm8, %v1309_v20, %v1069_v24  ;;  %v1076_v16 = vmul.f32 %v1311_v19, %v1075_v62 }
 0x920   :  { %v1086_v27 = vmul.f32 %v1073_v26, %v1940_v41 }
 0x921   :  { %v1077_v63 = vmul.f32 0.5, %v1076_v16  ;;  %v1105_v33 = vpop.xlane.xlu1 %1104 }
 0x922   :  { %v1116_v28 = vadd.f32 %v1115_v5, %v1105_v33  ;;  %v1091_v29 = vmul.f32 %v1956_v9, %v1086_v27 }
 0x923   :  { %v1078_v61 = vsub.f32 1.5, %v1077_v63 }
 0x924   :  { %1121 = vst.msk [vmem:[%s2004_s6] sm:$0xff] %vm1120_vm9, %v1116_v28  ;;  %v1096_v6 = vadd.f32 %v1958_v1, %v1091_v29 }
 0x925   :  { %v1079_v4 = vmul.f32 %v1311_v19, %v1078_v61 }
 0x926   :  { %v1101_v41 = vmul.f32 %v1961_v31, %v1096_v6 }
 0x927   :  { %v1083_v49 = vsel %vm1082_vm12, %v1311_v19, %v1079_v4 }
 0x928   :  { %v1109_v35 = vsel %vm176_vm1, %v1101_v41, 0.0  ;;  %v1087_v44 = vmul.f32 %v1083_v49, %v1947_v39 }
 0x929   :  { %1110 = vadd.xlane.f32.xlu2 %v1109_v35  ;;  %v1108_v48 = vpop.xlane.xlu0 %1107 }
 0x92a   :  { %v1117_v36 = vadd.f32 %v1115_v5, %v1108_v48  ;;  %v1092_v51 = vmul.f32 %v1956_v9, %v1087_v44 }
 0x92c   :  { %1122 = vst.msk [vmem:[%s2004_s6 + $0x8] sm:$0xff] %vm1120_vm9, %v1117_v36  ;;  %v1097_v53 = vadd.f32 %v1958_v1, %v1092_v51 }
 0x92e   :  { %v1102_v54 = vmul.f32 %v1961_v31, %v1097_v53 }
 0x930   :  { %v1112_v43 = vsel %vm176_vm1, %v1102_v54, 0.0 }
 0x931   :  { %1113 = vadd.xlane.f32.xlu1 %v1112_v43 }
 0x99c   :  { %v1111_v25 = vpop.xlane.xlu2 %1110 }
 0x99d   :  { %v1118_v55 = vadd.f32 %v1115_v5, %v1111_v25 }
 0x99f   :  { %1123 = vst.msk [vmem:[%s2004_s6 + $0x10] sm:$0xff] %vm1120_vm9, %v1118_v55 }
 0x9a4   :  { %v1114_v39 = vpop.xlane.xlu1 %1113 }
 0x9a5   :  { %v1119_v56 = vadd.f32 %v1115_v5, %v1114_v39 }
 0x9a7   :  { %1124 = vst.msk [vmem:[%s2004_s6 + $0x18] sm:$0xff] %vm1120_vm9, %v1119_v56 }

</bundles_post_ra>
